<compile_context>
chip_gen: v7x
topology: tpu7x:2x2x1
jax: 0.10.0
libtpu: 0.0.40
codegen_flags: <defaults>
</compile_context>

<pallas_src>
import functools

import numpy as np
import jax
import jax.numpy as jnp
from jax.experimental import pallas as pl
from jax.experimental.pallas import tpu as pltpu


# --------------------------------------------------------------------------------------
# Pallas kernel
# --------------------------------------------------------------------------------------
def mann_cell_kernel(gamma, R, MS, MD,
                     # inputs
                     xc_ref, h0_ref, c0_ref, wrp_ref, wup_ref, Mp_ref,
                     Wih_ref, Whh_ref, bg_ref, Whead_ref, bhead_ref,
                     E_ref, ET_ref, T_ref, TT_ref,
                     # outputs
                     big_ref, rw_ref, cn_ref):
    B = xc_ref.shape[0]
    LS = h0_ref.shape[1]
    f32 = jnp.float32
    bf16 = jnp.bfloat16

    # ---------------- controller LSTM (unbatched: B acts as time), fully unrolled ----------
    # Gate columns are host-permuted to (i, f, o, g): sigmoids contiguous, tanh gate last.
    gx = jnp.dot(xc_ref[...].astype(bf16), Wih_ref[...],
                 preferred_element_type=f32) + bg_ref[...]                      # [B, 4*LS]
    Whh_bf = Whh_ref[...]                                                       # bf16 [LS,4LS]

    h = h0_ref[...]                                                             # [1, LS] f32
    c = c0_ref[...]
    h_rows = []
    for t in range(B):                                    # B is static -> full unroll
        z = gx[t:t + 1, :] + jnp.dot(h.astype(bf16), Whh_bf,
                                     preferred_element_type=f32)                # [1, 4*LS]
        sig = jax.nn.sigmoid(z[:, :3 * LS])               # i | f | o in one EUP chain
        g_g = jnp.tanh(z[:, 3 * LS:])
        i_g = sig[:, 0:LS]
        f_g = sig[:, LS:2 * LS]
        o_g = sig[:, 2 * LS:3 * LS]
        c = f_g * c + i_g * g_g
        h = o_g * jnp.tanh(c)
        h_rows.append(h)
    hs = jnp.concatenate(h_rows, axis=0)                                        # [B, LS]
    cn_ref[...] = c

    # ---------------- head parameters: ONE fused matmul, columns reordered (keys | alphas) ---
    head = jnp.dot(hs.astype(bf16), Whead_ref[...],
                   preferred_element_type=f32) + bhead_ref[...]                 # [B, R*MD+R]
    k_all = jnp.tanh(head[:, :R * MD])                                          # [B, R*MD]
    alpha_all = jax.nn.sigmoid(head[:, R * MD:])                                # [B, R]

    # stack heads along the sublane (row) axis
    k_st = jnp.concatenate([k_all[:, i * MD:(i + 1) * MD] for i in range(R)], axis=0)  # [R*B,MD]
    alpha_st = jnp.concatenate([alpha_all[:, i:i + 1] for i in range(R)], axis=0)      # [R*B,1]

    wu_prev = wup_ref[...]                                                      # [B, MS]
    Mp = Mp_ref[...]                                                            # [B, MS*MD]
    wrp_st = wrp_ref[...]                                                       # [R*B, MS]

    # ---------------- least-used addressing via lane min-reductions (assumes tie-free w_u) --
    BIG = jnp.float32(3.0e38)
    masked = wu_prev
    lu_last = None
    thresh = None
    for r in range(R):
        cur_min = jnp.min(masked, axis=1, keepdims=True)                        # [B, 1]
        if r == 0:
            lu_last = (wu_prev <= cur_min).astype(f32)    # mask of THE least-used slot
        thresh = cur_min
        if r + 1 < R:
            masked = jnp.where(masked <= cur_min, BIG, masked)
    w_lu = (wu_prev <= thresh).astype(f32)                # mask of the R least-used slots

    # ---------------- cosine-similarity read addressing (all heads batched) -----------------
    # Constant 0/1 matrices (bf16, lossless) for flat-layout memory math:
    #   x[*,MS] @ E[MS,MS*MD]  -> slot value replicated across its MD columns
    #   y[*,MD] @ T[MD,MS*MD]  -> key tiled once per slot
    #   z[*,MS*MD] @ ET / TT   -> per-slot / per-dim reductions
    E = E_ref[...]
    ET = ET_ref[...]
    T = T_ref[...]
    TT = TT_ref[...]

    M_norm = jnp.sqrt(jnp.dot((Mp * Mp).astype(bf16), ET,
                              preferred_element_type=f32))                      # [B, MS]
    Mp_st = jnp.concatenate([Mp] * R, axis=0)                                   # [R*B, MS*MD]
    Mnorm_st = jnp.concatenate([M_norm] * R, axis=0)                            # [R*B, MS]

    k_tile_st = jnp.dot(k_st.astype(bf16), T, preferred_element_type=f32)       # [R*B, MS*MD]
    inner_st = jnp.dot((Mp_st * k_tile_st).astype(bf16), ET,
                       preferred_element_type=f32)                              # [R*B, MS]
    k_norm_st = jnp.sqrt(jnp.sum(k_st * k_st, axis=1, keepdims=True))           # [R*B, 1]
    K = inner_st / (Mnorm_st * k_norm_st + 1e-8)
    K_exp = jnp.exp(K)
    w_r_st = K_exp * pl.reciprocal(jnp.sum(K_exp, axis=1, keepdims=True), approx=True)

    # ---------------- write addressing ------------------------------------------------------
    w_lu_st = jnp.concatenate([w_lu] * R, axis=0)                               # [R*B, MS]
    w_w_st = alpha_st * wrp_st + (1.0 - alpha_st) * w_lu_st                     # [R*B, MS]

    # usage update: sum the per-head row blocks
    rw_sum = w_r_st + w_w_st
    head_sum = rw_sum[0:B]
    for i in range(1, R):
        head_sum = head_sum + rw_sum[i * B:(i + 1) * B]
    w_u = gamma * wu_prev + head_sum                                            # [B, MS]

    # ---------------- memory erase + rank-1 writes (flat, lane-dense) -----------------------
    erase = jnp.dot((1.0 - lu_last).astype(bf16), E, preferred_element_type=f32)  # [B, MS*MD]
    ww_tile_st = jnp.dot(w_w_st.astype(bf16), E, preferred_element_type=f32)       # [R*B,MS*MD]
    write_st = ww_tile_st * k_tile_st                     # flattened outer products, all heads
    M_new = Mp * erase
    for i in range(R):
        M_new = M_new + write_st[i * B:(i + 1) * B]

    # ---------------- reads from the NEW memory (all heads batched) --------------------------
    wr_tile_st = jnp.dot(w_r_st.astype(bf16), E, preferred_element_type=f32)       # [R*B,MS*MD]
    Mnew_st = jnp.concatenate([M_new] * R, axis=0)
    reads_st = jnp.dot((Mnew_st * wr_tile_st).astype(bf16), TT,
                       preferred_element_type=f32)                              # [R*B, MD]

    # ---------------- coalesced lane-dense stores --------------------------------------------
    big_ref[...] = jnp.concatenate([hs, M_new, w_u], axis=1)                    # [B, LS+MS*MD+MS]
    rw_ref[...] = jnp.concatenate([w_r_st, w_w_st, reads_st], axis=1)           # [R*B, 2*MS+MD]


# --------------------------------------------------------------------------------------
# Host wrapper
# --------------------------------------------------------------------------------------
def _expansion_constants(MS, MD):
    E = np.zeros((MS, MS * MD), np.float32)
    T = np.zeros((MD, MS * MD), np.float32)
    for s in range(MS):
        E[s, s * MD:(s + 1) * MD] = 1.0
    for d in range(MD):
        T[d, d::MD] = 1.0
    bf = jnp.bfloat16   # 0/1 entries -> lossless in bf16, half the constant DMA
    return (jnp.asarray(E, bf), jnp.asarray(E.T, bf),
            jnp.asarray(T, bf), jnp.asarray(T.T, bf))


def mann_cell_forward(inputs, state, params, gamma=0.95):
    W_ih, W_hh = params["W_ih"], params["W_hh"]
    b_ih, b_hh = params["b_ih"], params["b_hh"]
    W_out, b_out = params["W_out"], params["b_out"]

    reads_prev = state["read_vector_list"]                 # [R, B, MD]
    h0, c0 = state["controller_state"]                     # [1, LS] each
    wr_prev = state["w_r_list"]                            # [R, B, MS]
    wu_prev = state["w_u"]                                 # [B, MS]
    M_prev = state["M"]                                    # [B, MS, MD]

    R, B, MD = reads_prev.shape
    MS = wu_prev.shape[1]
    LS = W_hh.shape[1]
    P = MD + 1

    # ---- host-side glue: layout / column permutations / dtype casts only (no compute) ------
    xc = jnp.concatenate([inputs] + [reads_prev[i] for i in range(R)], axis=1)  # [B, IS]

    # PyTorch gate order (i, f, g, o) -> (i, f, o, g) so the three sigmoids are contiguous.
    gate_idx = np.concatenate([np.arange(0, LS), np.arange(LS, 2 * LS),
                               np.arange(3 * LS, 4 * LS), np.arange(2 * LS, 3 * LS)])
    Wih_T = W_ih.T[:, gate_idx].astype(jnp.bfloat16)        # [IS, 4LS]  bf16 weights
    Whh_T = W_hh.T[:, gate_idx].astype(jnp.bfloat16)        # [LS, 4LS]
    bg = (b_ih + b_hh)[gate_idx][None, :]                   # [1, 4LS]   f32

    # Head columns: per-head [k(MD), alpha] -> [all keys | all alphas].
    head_idx = np.concatenate(
        [np.concatenate([np.arange(i * P, i * P + MD) for i in range(R)]),
         np.array([i * P + MD for i in range(R)])])
    Whead = W_out.T[:, head_idx].astype(jnp.bfloat16)        # [LS, R*MD+R]
    bhead = b_out[head_idx][None, :]                         # [1, R*MD+R]

    wr_prev_st = wr_prev.reshape(R * B, MS)                  # head-major along sublanes
    M_prev_flat = M_prev.reshape(B, MS * MD)
    E, ET, T, TT = _expansion_constants(MS, MD)

    out_shape = (
        jax.ShapeDtypeStruct((B, LS + MS * MD + MS), jnp.float32),   # ctrl | M | w_u
        jax.ShapeDtypeStruct((R * B, 2 * MS + MD), jnp.float32),     # w_r | w_w | reads
        jax.ShapeDtypeStruct((1, LS), jnp.float32),                  # c_n
    )
    vmem = pl.BlockSpec(memory_space=pltpu.MemorySpace.VMEM)   # whole arrays resident in VMEM
    args = (xc, h0, c0, wr_prev_st, wu_prev, M_prev_flat,
            Wih_T, Whh_T, bg, Whead, bhead, E, ET, T, TT)

    big, rw, c_n = pl.pallas_call(
        functools.partial(mann_cell_kernel, float(gamma), R, MS, MD),
        out_shape=out_shape,
        in_specs=[vmem] * len(args),
        out_specs=tuple([vmem] * len(out_shape)),
    )(*args)

    ctrl = big[:, :LS]
    M_new = big[:, LS:LS + MS * MD].reshape(B, MS, MD)
    w_u = big[:, LS + MS * MD:]
    w_r = rw[:, :MS].reshape(R, B, MS)
    w_w = rw[:, MS:2 * MS].reshape(R, B, MS)
    reads = rw[:, 2 * MS:].reshape(R, B, MD)
    h_n = ctrl[B - 1:B, :]                                  # last controller row == h_n

    mann_output = jnp.concatenate([ctrl] + [reads[i] for i in range(R)], axis=1)
    new_state = {
        "controller_state": (h_n, c_n),
        "read_vector_list": reads,
        "w_r_list": w_r,
        "w_w_list": w_w,
        "w_u": w_u,
        "M": M_new,
    }
    return mann_output, new_state


# --------------------------------------------------------------------------------------
# Pure-JAX reference (mirrors the PyTorch forward) for validation
# --------------------------------------------------------------------------------------
def mann_cell_reference(inputs, state, params, gamma=0.95):
    W_ih, W_hh = params["W_ih"], params["W_hh"]
    b_ih, b_hh = params["b_ih"], params["b_hh"]
    W_out, b_out = params["W_out"], params["b_out"]
    reads_prev = state["read_vector_list"]
    R, B, MD = reads_prev.shape
    MS = state["w_u"].shape[1]
    LS = W_hh.shape[1]
    P = MD + 1

    xc = jnp.concatenate([inputs] + [reads_prev[i] for i in range(R)], axis=1)
    h0, c0 = state["controller_state"]

    def step(carry, x_t):
        h, c = carry
        z = x_t @ W_ih.T + b_ih + h @ W_hh.T + b_hh
        i = jax.nn.sigmoid(z[0:LS]); f = jax.nn.sigmoid(z[LS:2 * LS])
        g = jnp.tanh(z[2 * LS:3 * LS]); o = jax.nn.sigmoid(z[3 * LS:4 * LS])
        c = f * c + i * g
        h = o * jnp.tanh(c)
        return (h, c), h

    (h_n, c_n), hs = jax.lax.scan(step, (h0[0], c0[0]), xc)
    params_out = hs @ W_out.T + b_out

    wu_prev, M_prev = state["w_u"], state["M"]
    order = jnp.argsort(-wu_prev, axis=1)
    w_lu = jax.nn.one_hot(order[:, -R:], MS).sum(axis=1)
    lu_last = jax.nn.one_hot(order[:, -1], MS)

    w_r_list, w_w_list, k_list = [], [], []
    for i in range(R):
        head = params_out[:, i * P:(i + 1) * P]
        k = jnp.tanh(head[:, :MD])
        sig_alpha = jax.nn.sigmoid(head[:, -1:])
        inner = jnp.einsum("bmd,bd->bm", M_prev, k)
        k_norm = jnp.sqrt(jnp.sum(k * k, axis=1, keepdims=True))
        M_norm = jnp.sqrt(jnp.sum(M_prev * M_prev, axis=2))
        K = inner / (M_norm * k_norm + 1e-8)
        Ke = jnp.exp(K)
        w_r = Ke / Ke.sum(axis=1, keepdims=True)
        w_w = sig_alpha * state["w_r_list"][i] + (1.0 - sig_alpha) * w_lu
        w_r_list.append(w_r); w_w_list.append(w_w); k_list.append(k)

    w_u = gamma * wu_prev + sum(w_r_list) + sum(w_w_list)
    M = M_prev * (1.0 - lu_last)[:, :, None]
    for i in range(R):
        M = M + w_w_list[i][:, :, None] * k_list[i][:, None, :]
    reads = [jnp.sum(w_r_list[i][:, :, None] * M, axis=1) for i in range(R)]
    mann_output = jnp.concatenate([hs] + reads, axis=1)
    return mann_output, {
        "M": M, "w_u": w_u,
        "w_r": jnp.stack(w_r_list), "w_w": jnp.stack(w_w_list),
        "reads": jnp.stack(reads), "h_n": h_n[None], "c_n": c_n[None],
    }


# --------------------------------------------------------------------------------------
# Main
# --------------------------------------------------------------------------------------
if __name__ == "__main__":
    key = jax.random.PRNGKey(0)
    B, F = 8, 12                       # MANN batch (== LSTM sequence length), raw-input features
    LS, MS, MD, R = 128, 16, 16, 2     # lstm_size, memory_size, memory_dim, nb_reads
    IS = F + R * MD                    # LSTM input_size
    gamma = 0.95
    keys = jax.random.split(key, 10)

    def xavier(k, shape):
        fan_out, fan_in = shape
        bound = float(np.sqrt(6.0 / (fan_in + fan_out)))
        return jax.random.uniform(k, shape, jnp.float32, -bound, bound)

    # deterministic synthetic parameters (shapes per MANNCell.__init__)
    W_ih = xavier(keys[0], (4 * LS, IS))
    W_hh = jax.random.uniform(keys[1], (4 * LS, LS), jnp.float32,
                              -1.0 / np.sqrt(LS), 1.0 / np.sqrt(LS))
    b_ih = jnp.zeros((4 * LS,), jnp.float32)
    b_hh = jnp.zeros((4 * LS,), jnp.float32)
    P_total = R * (MD + 1)
    W_out = xavier(keys[2], (P_total, LS))
    b_out = jnp.zeros((P_total,), jnp.float32)
    params = dict(W_ih=W_ih, W_hh=W_hh, b_ih=b_ih, b_hh=b_hh, W_out=W_out, b_out=b_out)

    # deterministic example inputs / previous state (w_u tie-free so least-used is well defined)
    x = jax.random.normal(keys[3], (B, F), jnp.float32)
    reads0 = 0.1 * jax.random.normal(keys[4], (R, B, MD), jnp.float32)
    h0 = 0.1 * jax.random.normal(keys[5], (1, LS), jnp.float32)
    c0 = 0.1 * jax.random.normal(keys[6], (1, LS), jnp.float32)
    wr0 = jax.nn.softmax(jax.random.normal(keys[7], (R, B, MS), jnp.float32), axis=-1)
    wu0 = jax.random.uniform(keys[8], (B, MS), jnp.float32, 0.01, 1.0)
    M0 = 0.1 * jax.random.normal(keys[9], (B, MS, MD), jnp.float32)
    state = {"controller_state": (h0, c0), "read_vector_list": reads0,
             "w_r_list": wr0, "w_u": wu0, "M": M0}

    out, new_state = mann_cell_forward(x, state, params, gamma)
    jax.block_until_ready(out)

    ref_out, ref_state = mann_cell_reference(x, state, params, gamma)
    tol = dict(atol=1e-2, rtol=1e-2)   # loose: MXU matmuls use bf16 operands / f32 accumulate
    np.testing.assert_allclose(np.asarray(out), np.asarray(ref_out), **tol)
    np.testing.assert_allclose(np.asarray(new_state["M"]), np.asarray(ref_state["M"]), **tol)
    np.testing.assert_allclose(np.asarray(new_state["w_u"]), np.asarray(ref_state["w_u"]), **tol)
    np.testing.assert_allclose(np.asarray(new_state["w_r_list"]), np.asarray(ref_state["w_r"]), **tol)
    np.testing.assert_allclose(np.asarray(new_state["w_w_list"]), np.asarray(ref_state["w_w"]), **tol)
    np.testing.assert_allclose(np.asarray(new_state["read_vector_list"]),
                               np.asarray(ref_state["reads"]), **tol)
    np.testing.assert_allclose(np.asarray(new_state["controller_state"][0]),
                               np.asarray(ref_state["h_n"]), **tol)
    np.testing.assert_allclose(np.asarray(new_state["controller_state"][1]),
                               np.asarray(ref_state["c_n"]), **tol)

    print("KERNEL_OK")
</pallas_src>

<mosaic_0001>
module attributes {stable_mosaic.version = 11 : i64} {
  func.func @mann_cell_kernel(%arg0: memref<8x44xf32, #tpu.memory_space<vmem>>, %arg1: memref<1x128xf32, #tpu.memory_space<vmem>>, %arg2: memref<1x128xf32, #tpu.memory_space<vmem>>, %arg3: memref<16x16xf32, #tpu.memory_space<vmem>>, %arg4: memref<8x16xf32, #tpu.memory_space<vmem>>, %arg5: memref<8x256xf32, #tpu.memory_space<vmem>>, %arg6: memref<44x512xbf16, #tpu.memory_space<vmem>>, %arg7: memref<128x512xbf16, #tpu.memory_space<vmem>>, %arg8: memref<1x512xf32, #tpu.memory_space<vmem>>, %arg9: memref<128x34xbf16, #tpu.memory_space<vmem>>, %arg10: memref<1x34xf32, #tpu.memory_space<vmem>>, %arg11: memref<16x256xbf16, #tpu.memory_space<vmem>>, %arg12: memref<256x16xbf16, #tpu.memory_space<vmem>>, %arg13: memref<16x256xbf16, #tpu.memory_space<vmem>>, %arg14: memref<256x16xbf16, #tpu.memory_space<vmem>>, %arg15: memref<8x400xf32, #tpu.memory_space<vmem>>, %arg16: memref<16x48xf32, #tpu.memory_space<vmem>>, %arg17: memref<1x128xf32, #tpu.memory_space<vmem>>) attributes {dimension_semantics = [], scalar_prefetch = 0 : i64, scratch_operands = 0 : i64, tpu.core_type = #tpu.core_type<tc>} {
    %c0 = arith.constant 0 : index
    %c0_0 = arith.constant 0 : index
    %0 = vector.load %arg0[%c0, %c0_0] : memref<8x44xf32, #tpu.memory_space<vmem>>, vector<8x44xf32>
    %1 = arith.truncf %0 : vector<8x44xf32> to vector<8x44xbf16>
    %c0_1 = arith.constant 0 : index
    %c0_2 = arith.constant 0 : index
    %2 = vector.load %arg6[%c0_1, %c0_2] : memref<44x512xbf16, #tpu.memory_space<vmem>>, vector<44x512xbf16>
    %cst = arith.constant dense<0.000000e+00> : vector<8x512xf32>
    %3 = tpu.matmul %1, %2, %cst {dimension_numbers = #tpu.dot_dimension_numbers<[1], [0], [0], [1], [0, 0, 1, 1], [], []>} : vector<8x44xbf16>, vector<44x512xbf16>, vector<8x512xf32> -> vector<8x512xf32>
    %c0_3 = arith.constant 0 : index
    %c0_4 = arith.constant 0 : index
    %4 = vector.load %arg8[%c0_3, %c0_4] : memref<1x512xf32, #tpu.memory_space<vmem>>, vector<1x512xf32>
    %5 = vector.broadcast %4 : vector<1x512xf32> to vector<8x512xf32>
    %6 = arith.addf %3, %5 : vector<8x512xf32>
    %c0_5 = arith.constant 0 : index
    %c0_6 = arith.constant 0 : index
    %7 = vector.load %arg7[%c0_5, %c0_6] : memref<128x512xbf16, #tpu.memory_space<vmem>>, vector<128x512xbf16>
    %c0_7 = arith.constant 0 : index
    %c0_8 = arith.constant 0 : index
    %8 = vector.load %arg1[%c0_7, %c0_8] : memref<1x128xf32, #tpu.memory_space<vmem>>, vector<1x128xf32>
    %c0_9 = arith.constant 0 : index
    %c0_10 = arith.constant 0 : index
    %9 = vector.load %arg2[%c0_9, %c0_10] : memref<1x128xf32, #tpu.memory_space<vmem>>, vector<1x128xf32>
    %10 = vector.extract_strided_slice %6 {offsets = [0, 0], sizes = [1, 512], strides = [1, 1]} : vector<8x512xf32> to vector<1x512xf32>
    %11 = arith.truncf %8 : vector<1x128xf32> to vector<1x128xbf16>
    %cst_11 = arith.constant dense<0.000000e+00> : vector<1x512xf32>
    %12 = tpu.matmul %11, %7, %cst_11 {dimension_numbers = #tpu.dot_dimension_numbers<[1], [0], [0], [1], [0, 0, 1, 1], [], []>} : vector<1x128xbf16>, vector<128x512xbf16>, vector<1x512xf32> -> vector<1x512xf32>
    %13 = arith.addf %10, %12 : vector<1x512xf32>
    %14 = vector.extract_strided_slice %13 {offsets = [0, 0], sizes = [1, 384], strides = [1, 1]} : vector<1x512xf32> to vector<1x384xf32>
    %15 = arith.negf %14 : vector<1x384xf32>
    %16 = math.exp %15 : vector<1x384xf32>
    %cst_12 = arith.constant 1.000000e+00 : f32
    %17 = vector.broadcast %cst_12 : f32 to vector<1x384xf32>
    %18 = arith.addf %17, %16 : vector<1x384xf32>
    %19 = arith.divf %17, %18 : vector<1x384xf32>
    %20 = vector.extract_strided_slice %13 {offsets = [0, 384], sizes = [1, 128], strides = [1, 1]} : vector<1x512xf32> to vector<1x128xf32>
    %21 = math.tanh %20 : vector<1x128xf32>
    %22 = vector.extract_strided_slice %19 {offsets = [0, 0], sizes = [1, 128], strides = [1, 1]} : vector<1x384xf32> to vector<1x128xf32>
    %23 = vector.extract_strided_slice %19 {offsets = [0, 128], sizes = [1, 128], strides = [1, 1]} : vector<1x384xf32> to vector<1x128xf32>
    %24 = vector.extract_strided_slice %19 {offsets = [0, 256], sizes = [1, 128], strides = [1, 1]} : vector<1x384xf32> to vector<1x128xf32>
    %25 = arith.mulf %23, %9 : vector<1x128xf32>
    %26 = arith.mulf %22, %21 : vector<1x128xf32>
    %27 = arith.addf %25, %26 : vector<1x128xf32>
    %28 = math.tanh %27 : vector<1x128xf32>
    %29 = arith.mulf %24, %28 : vector<1x128xf32>
    %30 = vector.extract_strided_slice %6 {offsets = [1, 0], sizes = [1, 512], strides = [1, 1]} : vector<8x512xf32> to vector<1x512xf32>
    %31 = arith.truncf %29 : vector<1x128xf32> to vector<1x128xbf16>
    %cst_13 = arith.constant dense<0.000000e+00> : vector<1x512xf32>
    %32 = tpu.matmul %31, %7, %cst_13 {dimension_numbers = #tpu.dot_dimension_numbers<[1], [0], [0], [1], [0, 0, 1, 1], [], []>} : vector<1x128xbf16>, vector<128x512xbf16>, vector<1x512xf32> -> vector<1x512xf32>
    %33 = arith.addf %30, %32 : vector<1x512xf32>
    %34 = vector.extract_strided_slice %33 {offsets = [0, 0], sizes = [1, 384], strides = [1, 1]} : vector<1x512xf32> to vector<1x384xf32>
    %35 = arith.negf %34 : vector<1x384xf32>
    %36 = math.exp %35 : vector<1x384xf32>
    %cst_14 = arith.constant 1.000000e+00 : f32
    %37 = vector.broadcast %cst_14 : f32 to vector<1x384xf32>
    %38 = arith.addf %37, %36 : vector<1x384xf32>
    %39 = arith.divf %37, %38 : vector<1x384xf32>
    %40 = vector.extract_strided_slice %33 {offsets = [0, 384], sizes = [1, 128], strides = [1, 1]} : vector<1x512xf32> to vector<1x128xf32>
    %41 = math.tanh %40 : vector<1x128xf32>
    %42 = vector.extract_strided_slice %39 {offsets = [0, 0], sizes = [1, 128], strides = [1, 1]} : vector<1x384xf32> to vector<1x128xf32>
    %43 = vector.extract_strided_slice %39 {offsets = [0, 128], sizes = [1, 128], strides = [1, 1]} : vector<1x384xf32> to vector<1x128xf32>
    %44 = vector.extract_strided_slice %39 {offsets = [0, 256], sizes = [1, 128], strides = [1, 1]} : vector<1x384xf32> to vector<1x128xf32>
    %45 = arith.mulf %43, %27 : vector<1x128xf32>
    %46 = arith.mulf %42, %41 : vector<1x128xf32>
    %47 = arith.addf %45, %46 : vector<1x128xf32>
    %48 = math.tanh %47 : vector<1x128xf32>
    %49 = arith.mulf %44, %48 : vector<1x128xf32>
    %50 = vector.extract_strided_slice %6 {offsets = [2, 0], sizes = [1, 512], strides = [1, 1]} : vector<8x512xf32> to vector<1x512xf32>
    %51 = arith.truncf %49 : vector<1x128xf32> to vector<1x128xbf16>
    %cst_15 = arith.constant dense<0.000000e+00> : vector<1x512xf32>
    %52 = tpu.matmul %51, %7, %cst_15 {dimension_numbers = #tpu.dot_dimension_numbers<[1], [0], [0], [1], [0, 0, 1, 1], [], []>} : vector<1x128xbf16>, vector<128x512xbf16>, vector<1x512xf32> -> vector<1x512xf32>
    %53 = arith.addf %50, %52 : vector<1x512xf32>
    %54 = vector.extract_strided_slice %53 {offsets = [0, 0], sizes = [1, 384], strides = [1, 1]} : vector<1x512xf32> to vector<1x384xf32>
    %55 = arith.negf %54 : vector<1x384xf32>
    %56 = math.exp %55 : vector<1x384xf32>
    %cst_16 = arith.constant 1.000000e+00 : f32
    %57 = vector.broadcast %cst_16 : f32 to vector<1x384xf32>
    %58 = arith.addf %57, %56 : vector<1x384xf32>
    %59 = arith.divf %57, %58 : vector<1x384xf32>
    %60 = vector.extract_strided_slice %53 {offsets = [0, 384], sizes = [1, 128], strides = [1, 1]} : vector<1x512xf32> to vector<1x128xf32>
    %61 = math.tanh %60 : vector<1x128xf32>
    %62 = vector.extract_strided_slice %59 {offsets = [0, 0], sizes = [1, 128], strides = [1, 1]} : vector<1x384xf32> to vector<1x128xf32>
    %63 = vector.extract_strided_slice %59 {offsets = [0, 128], sizes = [1, 128], strides = [1, 1]} : vector<1x384xf32> to vector<1x128xf32>
    %64 = vector.extract_strided_slice %59 {offsets = [0, 256], sizes = [1, 128], strides = [1, 1]} : vector<1x384xf32> to vector<1x128xf32>
    %65 = arith.mulf %63, %47 : vector<1x128xf32>
    %66 = arith.mulf %62, %61 : vector<1x128xf32>
    %67 = arith.addf %65, %66 : vector<1x128xf32>
    %68 = math.tanh %67 : vector<1x128xf32>
    %69 = arith.mulf %64, %68 : vector<1x128xf32>
    %70 = vector.extract_strided_slice %6 {offsets = [3, 0], sizes = [1, 512], strides = [1, 1]} : vector<8x512xf32> to vector<1x512xf32>
    %71 = arith.truncf %69 : vector<1x128xf32> to vector<1x128xbf16>
    %cst_17 = arith.constant dense<0.000000e+00> : vector<1x512xf32>
    %72 = tpu.matmul %71, %7, %cst_17 {dimension_numbers = #tpu.dot_dimension_numbers<[1], [0], [0], [1], [0, 0, 1, 1], [], []>} : vector<1x128xbf16>, vector<128x512xbf16>, vector<1x512xf32> -> vector<1x512xf32>
    %73 = arith.addf %70, %72 : vector<1x512xf32>
    %74 = vector.extract_strided_slice %73 {offsets = [0, 0], sizes = [1, 384], strides = [1, 1]} : vector<1x512xf32> to vector<1x384xf32>
    %75 = arith.negf %74 : vector<1x384xf32>
    %76 = math.exp %75 : vector<1x384xf32>
    %cst_18 = arith.constant 1.000000e+00 : f32
    %77 = vector.broadcast %cst_18 : f32 to vector<1x384xf32>
    %78 = arith.addf %77, %76 : vector<1x384xf32>
    %79 = arith.divf %77, %78 : vector<1x384xf32>
    %80 = vector.extract_strided_slice %73 {offsets = [0, 384], sizes = [1, 128], strides = [1, 1]} : vector<1x512xf32> to vector<1x128xf32>
    %81 = math.tanh %80 : vector<1x128xf32>
    %82 = vector.extract_strided_slice %79 {offsets = [0, 0], sizes = [1, 128], strides = [1, 1]} : vector<1x384xf32> to vector<1x128xf32>
    %83 = vector.extract_strided_slice %79 {offsets = [0, 128], sizes = [1, 128], strides = [1, 1]} : vector<1x384xf32> to vector<1x128xf32>
    %84 = vector.extract_strided_slice %79 {offsets = [0, 256], sizes = [1, 128], strides = [1, 1]} : vector<1x384xf32> to vector<1x128xf32>
    %85 = arith.mulf %83, %67 : vector<1x128xf32>
    %86 = arith.mulf %82, %81 : vector<1x128xf32>
    %87 = arith.addf %85, %86 : vector<1x128xf32>
    %88 = math.tanh %87 : vector<1x128xf32>
    %89 = arith.mulf %84, %88 : vector<1x128xf32>
    %90 = vector.extract_strided_slice %6 {offsets = [4, 0], sizes = [1, 512], strides = [1, 1]} : vector<8x512xf32> to vector<1x512xf32>
    %91 = arith.truncf %89 : vector<1x128xf32> to vector<1x128xbf16>
    %cst_19 = arith.constant dense<0.000000e+00> : vector<1x512xf32>
    %92 = tpu.matmul %91, %7, %cst_19 {dimension_numbers = #tpu.dot_dimension_numbers<[1], [0], [0], [1], [0, 0, 1, 1], [], []>} : vector<1x128xbf16>, vector<128x512xbf16>, vector<1x512xf32> -> vector<1x512xf32>
    %93 = arith.addf %90, %92 : vector<1x512xf32>
    %94 = vector.extract_strided_slice %93 {offsets = [0, 0], sizes = [1, 384], strides = [1, 1]} : vector<1x512xf32> to vector<1x384xf32>
    %95 = arith.negf %94 : vector<1x384xf32>
    %96 = math.exp %95 : vector<1x384xf32>
    %cst_20 = arith.constant 1.000000e+00 : f32
    %97 = vector.broadcast %cst_20 : f32 to vector<1x384xf32>
    %98 = arith.addf %97, %96 : vector<1x384xf32>
    %99 = arith.divf %97, %98 : vector<1x384xf32>
    %100 = vector.extract_strided_slice %93 {offsets = [0, 384], sizes = [1, 128], strides = [1, 1]} : vector<1x512xf32> to vector<1x128xf32>
    %101 = math.tanh %100 : vector<1x128xf32>
    %102 = vector.extract_strided_slice %99 {offsets = [0, 0], sizes = [1, 128], strides = [1, 1]} : vector<1x384xf32> to vector<1x128xf32>
    %103 = vector.extract_strided_slice %99 {offsets = [0, 128], sizes = [1, 128], strides = [1, 1]} : vector<1x384xf32> to vector<1x128xf32>
    %104 = vector.extract_strided_slice %99 {offsets = [0, 256], sizes = [1, 128], strides = [1, 1]} : vector<1x384xf32> to vector<1x128xf32>
    %105 = arith.mulf %103, %87 : vector<1x128xf32>
    %106 = arith.mulf %102, %101 : vector<1x128xf32>
    %107 = arith.addf %105, %106 : vector<1x128xf32>
    %108 = math.tanh %107 : vector<1x128xf32>
    %109 = arith.mulf %104, %108 : vector<1x128xf32>
    %110 = vector.extract_strided_slice %6 {offsets = [5, 0], sizes = [1, 512], strides = [1, 1]} : vector<8x512xf32> to vector<1x512xf32>
    %111 = arith.truncf %109 : vector<1x128xf32> to vector<1x128xbf16>
    %cst_21 = arith.constant dense<0.000000e+00> : vector<1x512xf32>
    %112 = tpu.matmul %111, %7, %cst_21 {dimension_numbers = #tpu.dot_dimension_numbers<[1], [0], [0], [1], [0, 0, 1, 1], [], []>} : vector<1x128xbf16>, vector<128x512xbf16>, vector<1x512xf32> -> vector<1x512xf32>
    %113 = arith.addf %110, %112 : vector<1x512xf32>
    %114 = vector.extract_strided_slice %113 {offsets = [0, 0], sizes = [1, 384], strides = [1, 1]} : vector<1x512xf32> to vector<1x384xf32>
    %115 = arith.negf %114 : vector<1x384xf32>
    %116 = math.exp %115 : vector<1x384xf32>
    %cst_22 = arith.constant 1.000000e+00 : f32
    %117 = vector.broadcast %cst_22 : f32 to vector<1x384xf32>
    %118 = arith.addf %117, %116 : vector<1x384xf32>
    %119 = arith.divf %117, %118 : vector<1x384xf32>
    %120 = vector.extract_strided_slice %113 {offsets = [0, 384], sizes = [1, 128], strides = [1, 1]} : vector<1x512xf32> to vector<1x128xf32>
    %121 = math.tanh %120 : vector<1x128xf32>
    %122 = vector.extract_strided_slice %119 {offsets = [0, 0], sizes = [1, 128], strides = [1, 1]} : vector<1x384xf32> to vector<1x128xf32>
    %123 = vector.extract_strided_slice %119 {offsets = [0, 128], sizes = [1, 128], strides = [1, 1]} : vector<1x384xf32> to vector<1x128xf32>
    %124 = vector.extract_strided_slice %119 {offsets = [0, 256], sizes = [1, 128], strides = [1, 1]} : vector<1x384xf32> to vector<1x128xf32>
    %125 = arith.mulf %123, %107 : vector<1x128xf32>
    %126 = arith.mulf %122, %121 : vector<1x128xf32>
    %127 = arith.addf %125, %126 : vector<1x128xf32>
    %128 = math.tanh %127 : vector<1x128xf32>
    %129 = arith.mulf %124, %128 : vector<1x128xf32>
    %130 = vector.extract_strided_slice %6 {offsets = [6, 0], sizes = [1, 512], strides = [1, 1]} : vector<8x512xf32> to vector<1x512xf32>
    %131 = arith.truncf %129 : vector<1x128xf32> to vector<1x128xbf16>
    %cst_23 = arith.constant dense<0.000000e+00> : vector<1x512xf32>
    %132 = tpu.matmul %131, %7, %cst_23 {dimension_numbers = #tpu.dot_dimension_numbers<[1], [0], [0], [1], [0, 0, 1, 1], [], []>} : vector<1x128xbf16>, vector<128x512xbf16>, vector<1x512xf32> -> vector<1x512xf32>
    %133 = arith.addf %130, %132 : vector<1x512xf32>
    %134 = vector.extract_strided_slice %133 {offsets = [0, 0], sizes = [1, 384], strides = [1, 1]} : vector<1x512xf32> to vector<1x384xf32>
    %135 = arith.negf %134 : vector<1x384xf32>
    %136 = math.exp %135 : vector<1x384xf32>
    %cst_24 = arith.constant 1.000000e+00 : f32
    %137 = vector.broadcast %cst_24 : f32 to vector<1x384xf32>
    %138 = arith.addf %137, %136 : vector<1x384xf32>
    %139 = arith.divf %137, %138 : vector<1x384xf32>
    %140 = vector.extract_strided_slice %133 {offsets = [0, 384], sizes = [1, 128], strides = [1, 1]} : vector<1x512xf32> to vector<1x128xf32>
    %141 = math.tanh %140 : vector<1x128xf32>
    %142 = vector.extract_strided_slice %139 {offsets = [0, 0], sizes = [1, 128], strides = [1, 1]} : vector<1x384xf32> to vector<1x128xf32>
    %143 = vector.extract_strided_slice %139 {offsets = [0, 128], sizes = [1, 128], strides = [1, 1]} : vector<1x384xf32> to vector<1x128xf32>
    %144 = vector.extract_strided_slice %139 {offsets = [0, 256], sizes = [1, 128], strides = [1, 1]} : vector<1x384xf32> to vector<1x128xf32>
    %145 = arith.mulf %143, %127 : vector<1x128xf32>
    %146 = arith.mulf %142, %141 : vector<1x128xf32>
    %147 = arith.addf %145, %146 : vector<1x128xf32>
    %148 = math.tanh %147 : vector<1x128xf32>
    %149 = arith.mulf %144, %148 : vector<1x128xf32>
    %150 = vector.extract_strided_slice %6 {offsets = [7, 0], sizes = [1, 512], strides = [1, 1]} : vector<8x512xf32> to vector<1x512xf32>
    %151 = arith.truncf %149 : vector<1x128xf32> to vector<1x128xbf16>
    %cst_25 = arith.constant dense<0.000000e+00> : vector<1x512xf32>
    %152 = tpu.matmul %151, %7, %cst_25 {dimension_numbers = #tpu.dot_dimension_numbers<[1], [0], [0], [1], [0, 0, 1, 1], [], []>} : vector<1x128xbf16>, vector<128x512xbf16>, vector<1x512xf32> -> vector<1x512xf32>
    %153 = arith.addf %150, %152 : vector<1x512xf32>
    %154 = vector.extract_strided_slice %153 {offsets = [0, 0], sizes = [1, 384], strides = [1, 1]} : vector<1x512xf32> to vector<1x384xf32>
    %155 = arith.negf %154 : vector<1x384xf32>
    %156 = math.exp %155 : vector<1x384xf32>
    %cst_26 = arith.constant 1.000000e+00 : f32
    %157 = vector.broadcast %cst_26 : f32 to vector<1x384xf32>
    %158 = arith.addf %157, %156 : vector<1x384xf32>
    %159 = arith.divf %157, %158 : vector<1x384xf32>
    %160 = vector.extract_strided_slice %153 {offsets = [0, 384], sizes = [1, 128], strides = [1, 1]} : vector<1x512xf32> to vector<1x128xf32>
    %161 = math.tanh %160 : vector<1x128xf32>
    %162 = vector.extract_strided_slice %159 {offsets = [0, 0], sizes = [1, 128], strides = [1, 1]} : vector<1x384xf32> to vector<1x128xf32>
    %163 = vector.extract_strided_slice %159 {offsets = [0, 128], sizes = [1, 128], strides = [1, 1]} : vector<1x384xf32> to vector<1x128xf32>
    %164 = vector.extract_strided_slice %159 {offsets = [0, 256], sizes = [1, 128], strides = [1, 1]} : vector<1x384xf32> to vector<1x128xf32>
    %165 = arith.mulf %163, %147 : vector<1x128xf32>
    %166 = arith.mulf %162, %161 : vector<1x128xf32>
    %167 = arith.addf %165, %166 : vector<1x128xf32>
    %168 = math.tanh %167 : vector<1x128xf32>
    %169 = arith.mulf %164, %168 : vector<1x128xf32>
    %170 = tpu.concatenate %29, %49, %69, %89, %109, %129, %149, %169 in 0 : vector<1x128xf32>, vector<1x128xf32>, vector<1x128xf32>, vector<1x128xf32>, vector<1x128xf32>, vector<1x128xf32>, vector<1x128xf32>, vector<1x128xf32> -> vector<8x128xf32>
    %c0_27 = arith.constant 0 : index
    %c0_28 = arith.constant 0 : index
    %171 = vector.load %arg17[%c0_27, %c0_28] : memref<1x128xf32, #tpu.memory_space<vmem>>, vector<1x128xf32>
    tpu.vector_store %arg17[%c0_27, %c0_28], %167 {strides = array<i32>} : memref<1x128xf32, #tpu.memory_space<vmem>>, vector<1x128xf32>,
    %172 = arith.truncf %170 : vector<8x128xf32> to vector<8x128xbf16>
    %c0_29 = arith.constant 0 : index
    %c0_30 = arith.constant 0 : index
    %173 = vector.load %arg9[%c0_29, %c0_30] : memref<128x34xbf16, #tpu.memory_space<vmem>>, vector<128x34xbf16>
    %cst_31 = arith.constant dense<0.000000e+00> : vector<8x34xf32>
    %174 = tpu.matmul %172, %173, %cst_31 {dimension_numbers = #tpu.dot_dimension_numbers<[1], [0], [0], [1], [0, 0, 1, 1], [], []>} : vector<8x128xbf16>, vector<128x34xbf16>, vector<8x34xf32> -> vector<8x34xf32>
    %c0_32 = arith.constant 0 : index
    %c0_33 = arith.constant 0 : index
    %175 = vector.load %arg10[%c0_32, %c0_33] : memref<1x34xf32, #tpu.memory_space<vmem>>, vector<1x34xf32>
    %176 = vector.broadcast %175 : vector<1x34xf32> to vector<8x34xf32>
    %177 = arith.addf %174, %176 : vector<8x34xf32>
    %178 = vector.extract_strided_slice %177 {offsets = [0, 0], sizes = [8, 32], strides = [1, 1]} : vector<8x34xf32> to vector<8x32xf32>
    %179 = math.tanh %178 : vector<8x32xf32>
    %180 = vector.extract_strided_slice %177 {offsets = [0, 32], sizes = [8, 2], strides = [1, 1]} : vector<8x34xf32> to vector<8x2xf32>
    %181 = arith.negf %180 : vector<8x2xf32>
    %182 = math.exp %181 : vector<8x2xf32>
    %cst_34 = arith.constant 1.000000e+00 : f32
    %183 = vector.broadcast %cst_34 : f32 to vector<8x2xf32>
    %184 = arith.addf %183, %182 : vector<8x2xf32>
    %185 = arith.divf %183, %184 : vector<8x2xf32>
    %186 = vector.extract_strided_slice %179 {offsets = [0, 0], sizes = [8, 16], strides = [1, 1]} : vector<8x32xf32> to vector<8x16xf32>
    %187 = vector.extract_strided_slice %179 {offsets = [0, 16], sizes = [8, 16], strides = [1, 1]} : vector<8x32xf32> to vector<8x16xf32>
    %188 = tpu.concatenate %186, %187 in 0 : vector<8x16xf32>, vector<8x16xf32> -> vector<16x16xf32>
    %189 = vector.extract_strided_slice %185 {offsets = [0, 0], sizes = [8, 1], strides = [1, 1]} : vector<8x2xf32> to vector<8x1xf32>
    %190 = vector.extract_strided_slice %185 {offsets = [0, 1], sizes = [8, 1], strides = [1, 1]} : vector<8x2xf32> to vector<8x1xf32>
    %191 = tpu.concatenate %189, %190 in 0 : vector<8x1xf32>, vector<8x1xf32> -> vector<16x1xf32>
    %c0_35 = arith.constant 0 : index
    %c0_36 = arith.constant 0 : index
    %192 = vector.load %arg4[%c0_35, %c0_36] : memref<8x16xf32, #tpu.memory_space<vmem>>, vector<8x16xf32>
    %c0_37 = arith.constant 0 : index
    %c0_38 = arith.constant 0 : index
    %193 = vector.load %arg5[%c0_37, %c0_38] : memref<8x256xf32, #tpu.memory_space<vmem>>, vector<8x256xf32>
    %c0_39 = arith.constant 0 : index
    %c0_40 = arith.constant 0 : index
    %194 = vector.load %arg3[%c0_39, %c0_40] : memref<16x16xf32, #tpu.memory_space<vmem>>, vector<16x16xf32>
    %cst_41 = arith.constant dense<0x7F800000> : vector<8xf32>
    %195 = vector.multi_reduction <minimumf>, %192, %cst_41 [1] : vector<8x16xf32> to vector<8xf32>
    %196 = vector.shape_cast %195 : vector<8xf32> to vector<8x1xf32>
    %197 = vector.broadcast %196 : vector<8x1xf32> to vector<8x16xf32>
    %198 = arith.cmpf ole, %192, %197 : vector<8x16xf32>
    %199 = arith.extui %198 : vector<8x16xi1> to vector<8x16xi32>
    %200 = arith.sitofp %199 : vector<8x16xi32> to vector<8x16xf32>
    %201 = vector.broadcast %196 : vector<8x1xf32> to vector<8x16xf32>
    %202 = arith.cmpf ole, %192, %201 : vector<8x16xf32>
    %cst_42 = arith.constant 3.000000e+38 : f32
    %203 = vector.broadcast %cst_42 : f32 to vector<8x16xf32>
    %204 = arith.select %202, %203, %192 : vector<8x16xi1>, vector<8x16xf32>
    %cst_43 = arith.constant dense<0x7F800000> : vector<8xf32>
    %205 = vector.multi_reduction <minimumf>, %204, %cst_43 [1] : vector<8x16xf32> to vector<8xf32>
    %206 = vector.shape_cast %205 : vector<8xf32> to vector<8x1xf32>
    %207 = vector.broadcast %206 : vector<8x1xf32> to vector<8x16xf32>
    %208 = arith.cmpf ole, %192, %207 : vector<8x16xf32>
    %209 = arith.extui %208 : vector<8x16xi1> to vector<8x16xi32>
    %210 = arith.sitofp %209 : vector<8x16xi32> to vector<8x16xf32>
    %c0_44 = arith.constant 0 : index
    %c0_45 = arith.constant 0 : index
    %211 = vector.load %arg11[%c0_44, %c0_45] : memref<16x256xbf16, #tpu.memory_space<vmem>>, vector<16x256xbf16>
    %c0_46 = arith.constant 0 : index
    %c0_47 = arith.constant 0 : index
    %212 = vector.load %arg12[%c0_46, %c0_47] : memref<256x16xbf16, #tpu.memory_space<vmem>>, vector<256x16xbf16>
    %c0_48 = arith.constant 0 : index
    %c0_49 = arith.constant 0 : index
    %213 = vector.load %arg13[%c0_48, %c0_49] : memref<16x256xbf16, #tpu.memory_space<vmem>>, vector<16x256xbf16>
    %c0_50 = arith.constant 0 : index
    %c0_51 = arith.constant 0 : index
    %214 = vector.load %arg14[%c0_50, %c0_51] : memref<256x16xbf16, #tpu.memory_space<vmem>>, vector<256x16xbf16>
    %215 = arith.mulf %193, %193 : vector<8x256xf32>
    %216 = arith.truncf %215 : vector<8x256xf32> to vector<8x256xbf16>
    %cst_52 = arith.constant dense<0.000000e+00> : vector<8x16xf32>
    %217 = tpu.matmul %216, %212, %cst_52 {dimension_numbers = #tpu.dot_dimension_numbers<[1], [0], [0], [1], [0, 0, 1, 1], [], []>} : vector<8x256xbf16>, vector<256x16xbf16>, vector<8x16xf32> -> vector<8x16xf32>
    %218 = math.sqrt %217 : vector<8x16xf32>
    %219 = tpu.concatenate %193, %193 in 0 : vector<8x256xf32>, vector<8x256xf32> -> vector<16x256xf32>
    %220 = tpu.concatenate %218, %218 in 0 : vector<8x16xf32>, vector<8x16xf32> -> vector<16x16xf32>
    %221 = arith.truncf %188 : vector<16x16xf32> to vector<16x16xbf16>
    %cst_53 = arith.constant dense<0.000000e+00> : vector<16x256xf32>
    %222 = tpu.matmul %221, %213, %cst_53 {dimension_numbers = #tpu.dot_dimension_numbers<[1], [0], [0], [1], [0, 0, 1, 1], [], []>} : vector<16x16xbf16>, vector<16x256xbf16>, vector<16x256xf32> -> vector<16x256xf32>
    %223 = arith.mulf %219, %222 : vector<16x256xf32>
    %224 = arith.truncf %223 : vector<16x256xf32> to vector<16x256xbf16>
    %cst_54 = arith.constant dense<0.000000e+00> : vector<16x16xf32>
    %225 = tpu.matmul %224, %212, %cst_54 {dimension_numbers = #tpu.dot_dimension_numbers<[1], [0], [0], [1], [0, 0, 1, 1], [], []>} : vector<16x256xbf16>, vector<256x16xbf16>, vector<16x16xf32> -> vector<16x16xf32>
    %226 = arith.mulf %188, %188 : vector<16x16xf32>
    %cst_55 = arith.constant dense<0.000000e+00> : vector<16xf32>
    %227 = vector.multi_reduction <add>, %226, %cst_55 [1] : vector<16x16xf32> to vector<16xf32>
    %228 = vector.shape_cast %227 : vector<16xf32> to vector<16x1xf32>
    %229 = math.sqrt %228 : vector<16x1xf32>
    %230 = vector.broadcast %229 : vector<16x1xf32> to vector<16x16xf32>
    %231 = arith.mulf %220, %230 : vector<16x16xf32>
    %cst_56 = arith.constant 9.99999993E-9 : f32
    %232 = vector.broadcast %cst_56 : f32 to vector<16x16xf32>
    %233 = arith.addf %231, %232 : vector<16x16xf32>
    %234 = arith.divf %225, %233 : vector<16x16xf32>
    %235 = math.exp %234 : vector<16x16xf32>
    %cst_57 = arith.constant dense<0.000000e+00> : vector<16xf32>
    %236 = vector.multi_reduction <add>, %235, %cst_57 [1] : vector<16x16xf32> to vector<16xf32>
    %237 = vector.shape_cast %236 : vector<16xf32> to vector<16x1xf32>
    %238 = tpu.reciprocal %237 {approx = true} : vector<16x1xf32> -> vector<16x1xf32>
    %239 = vector.broadcast %238 : vector<16x1xf32> to vector<16x16xf32>
    %240 = arith.mulf %235, %239 : vector<16x16xf32>
    %241 = tpu.concatenate %210, %210 in 0 : vector<8x16xf32>, vector<8x16xf32> -> vector<16x16xf32>
    %242 = vector.broadcast %191 : vector<16x1xf32> to vector<16x16xf32>
    %243 = arith.mulf %242, %194 : vector<16x16xf32>
    %cst_58 = arith.constant 1.000000e+00 : f32
    %244 = vector.broadcast %cst_58 : f32 to vector<16x1xf32>
    %245 = arith.subf %244, %191 : vector<16x1xf32>
    %246 = vector.broadcast %245 : vector<16x1xf32> to vector<16x16xf32>
    %247 = arith.mulf %246, %241 : vector<16x16xf32>
    %248 = arith.addf %243, %247 : vector<16x16xf32>
    %249 = arith.addf %240, %248 : vector<16x16xf32>
    %250 = vector.extract_strided_slice %249 {offsets = [0, 0], sizes = [8, 16], strides = [1, 1]} : vector<16x16xf32> to vector<8x16xf32>
    %251 = vector.extract_strided_slice %249 {offsets = [8, 0], sizes = [8, 16], strides = [1, 1]} : vector<16x16xf32> to vector<8x16xf32>
    %252 = arith.addf %250, %251 : vector<8x16xf32>
    %cst_59 = arith.constant 0.949999988 : f32
    %253 = vector.broadcast %cst_59 : f32 to vector<8x16xf32>
    %254 = arith.mulf %253, %192 : vector<8x16xf32>
    %255 = arith.addf %254, %252 : vector<8x16xf32>
    %cst_60 = arith.constant 1.000000e+00 : f32
    %256 = vector.broadcast %cst_60 : f32 to vector<8x16xf32>
    %257 = arith.subf %256, %200 : vector<8x16xf32>
    %258 = arith.truncf %257 : vector<8x16xf32> to vector<8x16xbf16>
    %cst_61 = arith.constant dense<0.000000e+00> : vector<8x256xf32>
    %259 = tpu.matmul %258, %211, %cst_61 {dimension_numbers = #tpu.dot_dimension_numbers<[1], [0], [0], [1], [0, 0, 1, 1], [], []>} : vector<8x16xbf16>, vector<16x256xbf16>, vector<8x256xf32> -> vector<8x256xf32>
    %260 = arith.truncf %248 : vector<16x16xf32> to vector<16x16xbf16>
    %cst_62 = arith.constant dense<0.000000e+00> : vector<16x256xf32>
    %261 = tpu.matmul %260, %211, %cst_62 {dimension_numbers = #tpu.dot_dimension_numbers<[1], [0], [0], [1], [0, 0, 1, 1], [], []>} : vector<16x16xbf16>, vector<16x256xbf16>, vector<16x256xf32> -> vector<16x256xf32>
    %262 = arith.mulf %261, %222 : vector<16x256xf32>
    %263 = arith.mulf %193, %259 : vector<8x256xf32>
    %264 = vector.extract_strided_slice %262 {offsets = [0, 0], sizes = [8, 256], strides = [1, 1]} : vector<16x256xf32> to vector<8x256xf32>
    %265 = arith.addf %263, %264 : vector<8x256xf32>
    %266 = vector.extract_strided_slice %262 {offsets = [8, 0], sizes = [8, 256], strides = [1, 1]} : vector<16x256xf32> to vector<8x256xf32>
    %267 = arith.addf %265, %266 : vector<8x256xf32>
    %268 = arith.truncf %240 : vector<16x16xf32> to vector<16x16xbf16>
    %cst_63 = arith.constant dense<0.000000e+00> : vector<16x256xf32>
    %269 = tpu.matmul %268, %211, %cst_63 {dimension_numbers = #tpu.dot_dimension_numbers<[1], [0], [0], [1], [0, 0, 1, 1], [], []>} : vector<16x16xbf16>, vector<16x256xbf16>, vector<16x256xf32> -> vector<16x256xf32>
    %270 = tpu.concatenate %267, %267 in 0 : vector<8x256xf32>, vector<8x256xf32> -> vector<16x256xf32>
    %271 = arith.mulf %270, %269 : vector<16x256xf32>
    %272 = arith.truncf %271 : vector<16x256xf32> to vector<16x256xbf16>
    %cst_64 = arith.constant dense<0.000000e+00> : vector<16x16xf32>
    %273 = tpu.matmul %272, %214, %cst_64 {dimension_numbers = #tpu.dot_dimension_numbers<[1], [0], [0], [1], [0, 0, 1, 1], [], []>} : vector<16x256xbf16>, vector<256x16xbf16>, vector<16x16xf32> -> vector<16x16xf32>
    %274 = tpu.concatenate %170, %267, %255 in 1 : vector<8x128xf32>, vector<8x256xf32>, vector<8x16xf32> -> vector<8x400xf32>
    %c0_65 = arith.constant 0 : index
    %c0_66 = arith.constant 0 : index
    %275 = vector.load %arg15[%c0_65, %c0_66] : memref<8x400xf32, #tpu.memory_space<vmem>>, vector<8x400xf32>
    tpu.vector_store %arg15[%c0_65, %c0_66], %274 {strides = array<i32>} : memref<8x400xf32, #tpu.memory_space<vmem>>, vector<8x400xf32>,
    %276 = tpu.concatenate %240, %248, %273 in 1 : vector<16x16xf32>, vector<16x16xf32>, vector<16x16xf32> -> vector<16x48xf32>
    %c0_67 = arith.constant 0 : index
    %c0_68 = arith.constant 0 : index
    %277 = vector.load %arg16[%c0_67, %c0_68] : memref<16x48xf32, #tpu.memory_space<vmem>>, vector<16x48xf32>
    tpu.vector_store %arg16[%c0_67, %c0_68], %276 {strides = array<i32>} : memref<16x48xf32, #tpu.memory_space<vmem>>, vector<16x48xf32>,
    return
  }
}

</mosaic_0001>

<bundles_post_ra>
// kernel: tpu_custom_call.1
= control target key start
LH: loop header
LB: loop body
LE: loop exit
PB: predicated region body
PF: predicated region fallthrough
CT: control target
= control target key end

     0   :  { %s4429_s0 = inlined_call_operand.hbm [shape: f32[8,44], index: 0, kind: input, shape index: {}]   ;;  %s4430_s1 = inlined_call_operand.vmem [shape: f32[1,128], index: 1, kind: input, shape index: {}]   ;;  %s4431_s2 = inlined_call_operand.vmem [shape: f32[1,128], index: 2, kind: input, shape index: {}]   ;;  %s4432_s3 = inlined_call_operand.hbm [shape: f32[16,16], index: 3, kind: input, shape index: {}]   ;;  %s4433_s4 = inlined_call_operand.hbm [shape: f32[8,16], index: 4, kind: input, shape index: {}]   ;;  %s4434_s5 = inlined_call_operand.hbm [shape: f32[8,256], index: 5, kind: input, shape index: {}]   ;;  %s4435_s6 = inlined_call_operand.vmem [shape: bf16[44,512], index: 6, kind: input, shape index: {}]   ;;  %s4436_s7 = inlined_call_operand.vmem [shape: bf16[128,512], index: 7, kind: input, shape index: {}]   ;;  %s4437_s8 = inlined_call_operand.hbm [shape: f32[1,512], index: 8, kind: input, shape index: {}]   ;;  %s4438_s9 = inlined_call_operand.vmem [shape: bf16[128,34], index: 9, kind: input, shape index: {}]   ;;  %s4439_s10 = inlined_call_operand.vmem [shape: f32[1,34], index: 10, kind: input, shape index: {}]   ;;  %s4440_s11 = inlined_call_operand.hbm [shape: bf16[16,256], index: 11, kind: input, shape index: {}]   ;;  %s4441_s12 = inlined_call_operand.vmem [shape: bf16[256,16], index: 12, kind: input, shape index: {}]   ;;  %s4442_s13 = inlined_call_operand.hbm [shape: bf16[16,256], index: 13, kind: input, shape index: {}]   ;;  %s4443_s14 = inlined_call_operand.vmem [shape: bf16[256,16], index: 14, kind: input, shape index: {}]   ;;  %s4444_s15 = inlined_call_operand.hbm [shape: f32[8,400], index: 15, kind: output, shape index: {0}]   ;;  %s4445_s16 = inlined_call_operand.hbm [shape: f32[16,48], index: 16, kind: output, shape index: {1}]   ;;  %s4446_s17 = inlined_call_operand.hbm [shape: f32[1,128], index: 17, kind: output, shape index: {2}]  }
   0x1   :  { %4449 = sst [smem:[#allocation24_spill]] %s4429_s0 }
   0x2   :  { %4450 = sst [smem:[#allocation25_spill]] %s4430_s1 }
   0x3   :  { %4451 = sst [smem:[#allocation26_spill]] %s4446_s17 }
   0x4   :  { %23 = vsyncpa [#allocation3], 0 }
   0x5   :  { %24 = vsyncpa [#allocation6], 0 }
   0x6   :  { %25 = vsyncpa [#allocation9], 0 }
   0x7   :  { %26 = vsyncpa [#allocation12], 0 }
   0x8   :  { %27 = vsyncpa [#allocation4], 0 }
   0x9   :  { %28 = vsyncpa [#allocation16], 0  ;;  %s3245_s24 = smov [#allocation5]   ;;  %s3013_s28 = scalar_lea.hbm %s4432_s3, 256 }
   0xa   :  { %s48_s25 = sshll.u32 %s3245_s24, 4  ;;  %p3014_p0 = scmp.ne.s32.totalorder %s4432_s3, %s3013_s28  ;;  %s49_s25 = int_to_ptr.vmem [resolvable:$true] %s48_s25 }
   0xb   :  { %p3017_p1 = scmp.lt.u32.totalorder %s3013_s28, %s4432_s3 }
   0xd   :  { %p3019_p2 = pnand %p3017_p1, %p3014_p0 }
   0xf   :  { %3022 = shalt.err (!%p3019_p2)
}
  0x10   :  { %s3023_s19 = scalar_lea.vmem %s49_s25, 256  ;;  %p3028_p4 = scmp.lt.s32.totalorder %s49_s25, %s49_s25 }
  0x11   :  { %p3024_p3 = scmp.ne.s32.totalorder %s49_s25, %s3023_s19  ;;  %p3029_p5 = scmp.lt.s32.totalorder %s3023_s19, %s3023_s19 }
  0x13   :  { %p3030_p6 = por %p3029_p5, %p3028_p4 }
  0x15   :  { %p3031_p7 = pnand %p3030_p6, %p3024_p3 }
  0x17   :  { %3034 = shalt.err (!%p3031_p7)
}
  0x18   :  { %s3246_s1 = smov 128   ;;  %s3247_s20 = smov 8  }
  0x19   :  { %54 = dma.hbm_to_vmem [thread:$0]  %s4432_s3, 256, %s49_s25, [#allocation6], %s3246_s1, %s3246_s1, %s3247_s20  }
  0x1a   :  { %s3248_s23 = smov [#allocation8]   ;;  %s3249_s26 = smov [#allocation11]  }
  0x1b   :  { %s71_s24 = sshll.u32 %s3248_s23, 4  ;;  %s98_s27 = sshll.u32 %s3249_s26, 4  ;;  %s72_s24 = int_to_ptr.vmem [resolvable:$true] %s71_s24  ;;  %s99_s27 = int_to_ptr.vmem [resolvable:$true] %s98_s27 }
  0x1c   :  { %s3035_s0 = scalar_lea.hbm %s4434_s5, 256 }
  0x1d   :  { %p3036_p8 = scmp.ne.s32.totalorder %s4434_s5, %s3035_s0  ;;  %p3039_p9 = scmp.lt.u32.totalorder %s3035_s0, %s4434_s5 }
  0x1f   :  { %p3041_p10 = pnand %p3039_p9, %p3036_p8 }
  0x21   :  { %3044 = shalt.err (!%p3041_p10)
}
  0x22   :  { %s3045_s3 = scalar_lea.vmem %s72_s24, 256  ;;  %p3050_p12 = scmp.lt.s32.totalorder %s72_s24, %s72_s24 }
  0x23   :  { %p3046_p11 = scmp.ne.s32.totalorder %s72_s24, %s3045_s3  ;;  %p3051_p13 = scmp.lt.s32.totalorder %s3045_s3, %s3045_s3 }
  0x25   :  { %p3052_p0 = por %p3051_p13, %p3050_p12 }
  0x27   :  { %p3053_p1 = pnand %p3052_p0, %p3046_p11 }
  0x29   :  { %3056 = shalt.err (!%p3053_p1)
}
  0x2a   :  { %74 = dma.hbm_to_vmem [thread:$0]  %s4434_s5, 256, %s72_s24, [#allocation9]  }
  0x2b   :  { %s3057_s26 = scalar_lea.hbm %s4440_s11, 256 }
  0x2c   :  { %p3058_p2 = scmp.ne.s32.totalorder %s4440_s11, %s3057_s26  ;;  %p3061_p3 = scmp.lt.u32.totalorder %s3057_s26, %s4440_s11 }
  0x2e   :  { %p3063_p4 = pnand %p3061_p3, %p3058_p2 }
  0x30   :  { %3066 = shalt.err (!%p3063_p4)
}
  0x31   :  { %s3067_s30 = scalar_lea.vmem %s99_s27, 256  ;;  %p3072_p6 = scmp.lt.s32.totalorder %s99_s27, %s99_s27 }
  0x32   :  { %p3068_p5 = scmp.ne.s32.totalorder %s99_s27, %s3067_s30  ;;  %p3073_p7 = scmp.lt.s32.totalorder %s3067_s30, %s3067_s30 }
  0x34   :  { %p3074_p8 = por %p3073_p7, %p3072_p6 }
  0x36   :  { %p3075_p9 = pnand %p3074_p8, %p3068_p5 }
  0x38   :  { %3078 = shalt.err (!%p3075_p9)
}
  0x39   :  { %104 = dma.hbm_to_vmem [thread:$0]  %s4440_s11, 256, %s99_s27, [#allocation12], %s3246_s1, %s3246_s1, %s3247_s20  }
  0x3a   :  { %s3250_s18 = smov [#allocation2]   ;;  %s3251_s3 = smov [#allocation7]  }
  0x3b   :  { %s35_s19 = sshll.u32 %s3250_s18, 4  ;;  %s61_s25 = sshll.u32 %s3251_s3, 4  ;;  %s36_s19 = int_to_ptr.vmem [resolvable:$true] %s35_s19  ;;  %s62_s25 = int_to_ptr.vmem [resolvable:$true] %s61_s25 }
  0x3c   :  { %s4452_s23 = sld [smem:[#allocation24_spill]] }
  0x42   :  { %s3079_s26 = scalar_lea.hbm %s4452_s23, 128 }
  0x43   :  { %p3080_p10 = scmp.ne.s32.totalorder %s4452_s23, %s3079_s26  ;;  %p3083_p11 = scmp.lt.u32.totalorder %s3079_s26, %s4452_s23 }
  0x45   :  { %p3085_p12 = pnand %p3083_p11, %p3080_p10 }
  0x47   :  { %3088 = shalt.err (!%p3085_p12)
}
  0x48   :  { %s3089_s11 = scalar_lea.vmem %s36_s19, 128  ;;  %p3094_p0 = scmp.lt.s32.totalorder %s36_s19, %s36_s19 }
  0x49   :  { %p3090_p13 = scmp.ne.s32.totalorder %s36_s19, %s3089_s11  ;;  %p3095_p1 = scmp.lt.s32.totalorder %s3089_s11, %s3089_s11 }
  0x4b   :  { %p3096_p2 = por %p3095_p1, %p3094_p0 }
  0x4d   :  { %p3097_p3 = pnand %p3096_p2, %p3090_p13 }
  0x4f   :  { %3100 = shalt.err (!%p3097_p3)
}
  0x50   :  { %38 = dma.hbm_to_vmem [thread:$0]  %s4452_s23, 128, %s36_s19, [#allocation3]  }
  0x51   :  { %s3101_s18 = scalar_lea.hbm %s4433_s4, 128 }
  0x52   :  { %p3102_p4 = scmp.ne.s32.totalorder %s4433_s4, %s3101_s18  ;;  %p3105_p5 = scmp.lt.u32.totalorder %s3101_s18, %s4433_s4 }
  0x54   :  { %p3107_p6 = pnand %p3105_p5, %p3102_p4 }
  0x56   :  { %3110 = shalt.err (!%p3107_p6)
}
  0x57   :  { %s3111_s17 = scalar_lea.vmem %s62_s25, 128  ;;  %p3116_p8 = scmp.lt.s32.totalorder %s62_s25, %s62_s25 }
  0x58   :  { %p3112_p7 = scmp.ne.s32.totalorder %s62_s25, %s3111_s17  ;;  %p3117_p9 = scmp.lt.s32.totalorder %s3111_s17, %s3111_s17 }
  0x5a   :  { %p3118_p10 = por %p3117_p9, %p3116_p8 }
  0x5c   :  { %p3119_p11 = pnand %p3118_p10, %p3112_p7 }
  0x5e   :  { %3122 = shalt.err (!%p3119_p11)
}
  0x5f   :  { %64 = dma.hbm_to_vmem [thread:$0]  %s4433_s4, 128, %s62_s25, [#allocation6]  }
  0x60   :  { %s3252_s28 = smov [#allocation10]   ;;  %s3253_s0 = smov [#allocation13]  }
  0x61   :  { %s85_s29 = sshll.u32 %s3252_s28, 4  ;;  %s112_s11 = sshll.u32 %s3253_s0, 4  ;;  %s86_s29 = int_to_ptr.vmem [resolvable:$true] %s85_s29  ;;  %s113_s11 = int_to_ptr.vmem [resolvable:$true] %s112_s11 }
  0x62   :  { %s3123_s5 = scalar_lea.hbm %s4437_s8, 64 }
  0x63   :  { %p3124_p12 = scmp.ne.s32.totalorder %s4437_s8, %s3123_s5  ;;  %p3127_p13 = scmp.lt.u32.totalorder %s3123_s5, %s4437_s8 }
  0x65   :  { %p3129_p0 = pnand %p3127_p13, %p3124_p12 }
  0x67   :  { %3132 = shalt.err (!%p3129_p0)
}
  0x68   :  { %s3133_s4 = scalar_lea.vmem %s86_s29, 64  ;;  %p3138_p2 = scmp.lt.s32.totalorder %s86_s29, %s86_s29 }
  0x69   :  { %p3134_p1 = scmp.ne.s32.totalorder %s86_s29, %s3133_s4  ;;  %p3139_p3 = scmp.lt.s32.totalorder %s3133_s4, %s3133_s4 }
  0x6b   :  { %p3140_p4 = por %p3139_p3, %p3138_p2 }
  0x6d   :  { %p3141_p5 = pnand %p3140_p4, %p3134_p1 }
  0x6f   :  { %3144 = shalt.err (!%p3141_p5)
}
  0x70   :  { %88 = dma.hbm_to_vmem [thread:$0]  %s4437_s8, 64, %s86_s29, [#allocation9]  }
  0x71   :  { %s3145_s19 = scalar_lea.hbm %s4442_s13, 256 }
  0x72   :  { %p3146_p6 = scmp.ne.s32.totalorder %s4442_s13, %s3145_s19  ;;  %p3149_p7 = scmp.lt.u32.totalorder %s3145_s19, %s4442_s13 }
  0x74   :  { %p3151_p8 = pnand %p3149_p7, %p3146_p6 }
  0x76   :  { %3154 = shalt.err (!%p3151_p8)
}
  0x77   :  { %s3155_s30 = scalar_lea.vmem %s113_s11, 256  ;;  %p3160_p10 = scmp.lt.s32.totalorder %s113_s11, %s113_s11 }
  0x78   :  { %p3156_p9 = scmp.ne.s32.totalorder %s113_s11, %s3155_s30  ;;  %p3161_p11 = scmp.lt.s32.totalorder %s3155_s30, %s3155_s30 }
  0x7a   :  { %p3162_p12 = por %p3161_p11, %p3160_p10 }
  0x7c   :  { %p3163_p13 = pnand %p3162_p12, %p3156_p9 }
  0x7e   :  { %3166 = shalt.err (!%p3163_p13)
}
  0x7f   :  { %118 = dma.hbm_to_vmem [thread:$0]  %s4442_s13, 256, %s113_s11, [#allocation12], %s3246_s1, %s3246_s1, %s3247_s20  }
  0x80   :  { %3233 = dma.done.wait [#allocation3], 128  }
  0x81   :  { %3234 = vsyncadd [#allocation3], 4294967168 }
  0x82   :  { %3235 = dma.done.wait [#allocation6], 384  }
  0x83   :  { %3236 = vsyncadd [#allocation6], 4294966912 }
  0x84   :  { %3237 = dma.done.wait [#allocation9], 320  }
  0x85   :  { %3238 = vsyncadd [#allocation9], 4294966976 }
  0x86   :  { %3239 = dma.done.wait [#allocation12], 512  }
  0x87   :  { %3240 = vsyncadd [#allocation12], 4294966784  ;;  %v3254_v0 = vmov 0   ;;  %v2717_v1 = vld [vmem:[%s4435_s6 + $0x4] ss:$16 sps:$4 sm:$0xff]   ;;  %vm239_vm0 = vcmask 1045504   ;;  %v159_v55 = vlaneseq }
  0x88   :  { %284 = vmatprep.mubr.bf16.mxu1 %v3254_v0  ;;  %561 = vmatprep.mubr.bf16.mxu0 %v3254_v0  ;;  %v3456_v2 = vld [vmem:[%s4436_s7 + $0x4] ss:$16 sps:$4 sm:$0xff]   ;;  %v2721_v3 = vld [vmem:[%s4435_s6] ss:$16 sps:$4 sm:$0xff]   ;;  %v2737_v15 = vld [vmem:[%s4435_s6 + $0xc] ss:$16 sps:$4 sm:$0xff]  }
  0x89   :  { %252 = vmatprep.subr.bf16.mxu1 %v2717_v1  ;;  %v3464_v4 = vld [vmem:[%s4436_s7] ss:$16 sps:$4 sm:$0xff]   ;;  %529 = vmatprep.subr.bf16.mxu0 %v3456_v2  ;;  %v2723_v5 = vld [vmem:[%s4435_s6 + $0x24] ss:$16 sps:$4 sm:$0xff]   ;;  %v2735_v18 = vld [vmem:[%s4435_s6 + $0x8] ss:$16 sps:$4 sm:$0xff]  }
  0x8a   :  { %253 = vmatpush1.bf16.msra.mxu1 %v2721_v3  ;;  %530 = vmatpush1.bf16.msra.mxu0 %v3464_v4  ;;  %v3474_v6 = vld [vmem:[%s4436_s7 + $0x24] ss:$16 sps:$4 sm:$0xff]   ;;  %v2727_v7 = vld [vmem:[%s4435_s6 + $0x20] ss:$16 sps:$4 sm:$0xff]   ;;  %vm235_vm1 = vcmask 359424   ;;  %s4453_s11 = sld [smem:[#allocation25_spill]] }
  0x8b   :  { %254 = vmatprep.subr.bf16.mxu1 %v2723_v5  ;;  %v3482_v8 = vld [vmem:[%s4436_s7 + $0x20] ss:$16 sps:$4 sm:$0xff]   ;;  %531 = vmatprep.subr.bf16.mxu0 %v3474_v6  ;;  %v2729_v9 = vld [vmem:[%s4435_s6 + $0x44] ss:$16 sps:$4 sm:$0x3f]   ;;  %v160_v56 = vshrl.u32 %v159_v55, 7 }
  0x8c   :  { %v3491_v10 = vld [vmem:[%s4436_s7 + $0x44] ss:$16 sps:$4 sm:$0xff]   ;;  %v2733_v11 = vld [vmem:[%s4435_s6 + $0x40] ss:$16 sps:$4 sm:$0x3f]   ;;  %vm1544_vm2 = vcmask 1040384  }
  0x8d   :  { %v143_v12 = vld [vmem:[#allocation2] sm:$0xff]  ;;  %v241_v14 = vsel %vm239_vm0, %v2733_v11, 0  ;;  %v2743_v20 = vld [vmem:[%s4435_s6 + $0x2c] ss:$16 sps:$4 sm:$0xff]   ;;  %v2741_v22 = vld [vmem:[%s4435_s6 + $0x28] ss:$16 sps:$4 sm:$0xff]  }
  0x8e   :  { %255 = vmatpush1.bf16.msra.mxu1 %v2727_v7  ;;  %532 = vmatpush1.bf16.msra.mxu0 %v3482_v8  ;;  %v3500_v13 = vld [vmem:[%s4436_s7 + $0x40] ss:$16 sps:$4 sm:$0xff]   ;;  %v3511_v16 = vld [vmem:[%s4436_s7 + $0x64] ss:$16 sps:$4 sm:$0xff]   ;;  %v144_v17 = vpack.c.bf16 %v143_v12, %v143_v12  ;;  %v3571_v30 = vld [vmem:[%s4436_s7 + $0xc] ss:$16 sps:$4 sm:$0xff]  }
  0x8f   :  { %2488 = vmatprep.subr.msk.bf16.mxu1 %vm239_vm0, %v2729_v9  ;;  %533 = vmatprep.subr.bf16.mxu0 %v3491_v10  ;;  %v3520_v19 = vld [vmem:[%s4436_s7 + $0x60] ss:$16 sps:$4 sm:$0xff]   ;;  %v3529_v21 = vld [vmem:[%s4436_s7 + $0x84] ss:$16 sps:$4 sm:$0xff]   ;;  %v3582_v32 = vld [vmem:[%s4436_s7 + $0x8] ss:$16 sps:$4 sm:$0xff]  }
  0x90   :  { %v3538_v23 = vld [vmem:[%s4436_s7 + $0x80] ss:$16 sps:$4 sm:$0xff]   ;;  %v2747_v24 = vld [vmem:[%s4435_s6 + $0x4c] ss:$16 sps:$4 sm:$0x3f]   ;;  %v161_v57 = vsub.s32 0, %v160_v56 }
  0x91   :  { %v3547_v25 = vld [vmem:[%s4436_s7 + $0xa4] ss:$16 sps:$4 sm:$0xff]   ;;  %v2751_v26 = vld [vmem:[%s4435_s6 + $0x48] ss:$16 sps:$4 sm:$0x3f]   ;;  %v165_v58 = vsub.s32 1, %v160_v56 }
  0x92   :  { %257 = vmatpush1.bf16.msra.mxu1 %v241_v14  ;;  %534 = vmatpush1.bf16.msra.mxu0 %v3500_v13  ;;  %v3558_v27 = vld [vmem:[%s4436_s7 + $0xa0] ss:$16 sps:$4 sm:$0xff]   ;;  %v247_v28 = vsel %vm239_vm0, %v2751_v26, 0  ;;  %v3566_v29 = vld [vmem:[%s4436_s7 + $0xc4] ss:$16 sps:$4 sm:$0xff]   ;;  %vm1546_vm3 = vcmask 1041408  }
  0x93   :  { %293 = vmatprep.subr.bf16.mxu1 %v2737_v15  ;;  %535 = vmatprep.subr.bf16.mxu0 %v3511_v16  ;;  %v3577_v31 = vld [vmem:[%s4436_s7 + $0xc0] ss:$16 sps:$4 sm:$0xff]   ;;  %v3589_v33 = vld [vmem:[%s4436_s7 + $0xe4] ss:$16 sps:$4 sm:$0xff]   ;;  %v3594_v34 = vld [vmem:[%s4436_s7 + $0x2c] ss:$16 sps:$4 sm:$0xff]  }
  0x94   :  { %v3600_v35 = vld [vmem:[%s4436_s7 + $0xe0] ss:$16 sps:$4 sm:$0xff]   ;;  %v3607_v36 = vld [vmem:[%s4436_s7 + $0x28] ss:$16 sps:$4 sm:$0xff]   ;;  %v3617_v38 = vld [vmem:[%s4436_s7 + $0x4c] ss:$16 sps:$4 sm:$0xff]  }
  0x95   :  { %2489 = vmatmul.mubr.msk.bf16.vlgmr.msra.gmra.mrb[0].mxu1 %vm235_vm1, %v144_v17  ;;  %v366_v37 = vld [vmem:[%s4453_s11] sm:$0x1]  ;;  %v3622_v39 = vld [vmem:[%s4436_s7 + $0x48] ss:$16 sps:$4 sm:$0xff]   ;;  %v3628_v41 = vld [vmem:[%s4436_s7 + $0x6c] ss:$16 sps:$4 sm:$0xff]  }
  0x96   :  { %294 = vmatpush1.bf16.msra.mxu1 %v2735_v18  ;;  %536 = vmatpush1.bf16.msra.mxu0 %v3520_v19  ;;  %v368_v40 = vpack.c.bf16 %v366_v37, %v366_v37  ;;  %v3637_v42 = vld [vmem:[%s4436_s7 + $0x68] ss:$16 sps:$4 sm:$0xff]   ;;  %v3642_v43 = vld [vmem:[%s4436_s7 + $0x8c] ss:$16 sps:$4 sm:$0xff]   ;;  %v157_v60 = vld [vmem:[#allocation10] sm:$0xf] }
  0x97   :  { %295 = vmatprep.subr.bf16.mxu1 %v2743_v20  ;;  %537 = vmatprep.subr.bf16.mxu0 %v3529_v21  ;;  %v3651_v44 = vld [vmem:[%s4436_s7 + $0x88] ss:$16 sps:$4 sm:$0xff]   ;;  %v3657_v45 = vld [vmem:[%s4436_s7 + $0xac] ss:$16 sps:$4 sm:$0xff]   ;;  %v162_v1 = vrot.slane %v157_v60, %v161_v57  ;;  %v166_v3 = vrot.slane %v157_v60, %v165_v58  ;;  %vm1548_vm4 = vcmask 1042432   ;;  %vm1550_vm5 = vcmask 1043456  }
  0x98   :  { %325 = vmatprep.mubr.bf16.mxu1 %v3254_v0  ;;  %v3666_v46 = vld [vmem:[%s4436_s7 + $0xa8] ss:$16 sps:$4 sm:$0xff]   ;;  %v3671_v47 = vld [vmem:[%s4436_s7 + $0xcc] ss:$16 sps:$4 sm:$0xff]   ;;  %vm1552_vm6 = vcmask 1044480   ;;  %vm3256_vm7 = vmmov 0  }
  0x99   :  { %v3680_v48 = vld [vmem:[%s4436_s7 + $0xc8] ss:$16 sps:$4 sm:$0xff]   ;;  %v3685_v49 = vld [vmem:[%s4436_s7 + $0xec] ss:$16 sps:$4 sm:$0xff]   ;;  %vm1555_vm8 = vcmask 1046528   ;;  %s3257_s22 = smov 112  }
  0x9a   :  { %296 = vmatpush1.bf16.msra.mxu1 %v2741_v22  ;;  %538 = vmatpush1.bf16.msra.mxu0 %v3538_v23  ;;  %v3694_v50 = vld [vmem:[%s4436_s7 + $0xe8] ss:$16 sps:$4 sm:$0xff]   ;;  %v169_v22 = vsub.s32 2, %v160_v56  ;;  %vm1690_vm9 = vcmask 130048   ;;  %s3260_s6 = smov 16  }
  0x9b   :  { %2490 = vmatprep.subr.msk.bf16.mxu1 %vm239_vm0, %v2747_v24  ;;  %539 = vmatprep.subr.bf16.mxu0 %v3547_v25  ;;  %v173_v24 = vsub.s32 3, %v160_v56 }
  0x9e   :  { %298 = vmatpush1.bf16.msra.mxu1 %v247_v28  ;;  %540 = vmatpush1.bf16.msra.mxu0 %v3558_v27  ;;  %v170_v28 = vrot.slane %v157_v60, %v169_v22 }
  0x9f   :  { %541 = vmatprep.subr.bf16.mxu0 %v3566_v29  ;;  %570 = vmatprep.subr.bf16.mxu1 %v3571_v30 }
  0xa1   :  { %2491 = vmatmul.mubr.msk.bf16.vlgmr.msra.gmra.mrb[4].mxu1 %vm235_vm1, %v144_v17 }
  0xa2   :  { %542 = vmatpush1.bf16.msra.mxu0 %v3577_v31  ;;  %571 = vmatpush1.bf16.msra.mxu1 %v3582_v32 }
  0xa3   :  { %543 = vmatprep.subr.bf16.mxu0 %v3589_v33  ;;  %572 = vmatprep.subr.bf16.mxu1 %v3594_v34 }
  0xa4   :  { %602 = vmatprep.mubr.bf16.mxu1 %v3254_v0 }
  0xa6   :  { %544 = vmatpush1.bf16.msra.mxu0 %v3600_v35  ;;  %573 = vmatpush1.bf16.msra.mxu1 %v3607_v36 }
  0xa7   :  { %574 = vmatprep.subr.bf16.mxu1 %v3617_v38  ;;  %640 = vmatprep.subr.bf16.mxu0 %v3456_v2 }
  0xa9   :  { %562 = vmatmul.mubr.bf16.vlgmr.msra.gmra.mrb[0].mxu0 %v368_v40 }
  0xaa   :  { %575 = vmatpush1.bf16.msra.mxu1 %v3622_v39  ;;  %641 = vmatpush1.bf16.msra.mxu0 %v3464_v4 }
  0xab   :  { %576 = vmatprep.subr.bf16.mxu1 %v3628_v41  ;;  %642 = vmatprep.subr.bf16.mxu0 %v3474_v6 }
  0xac   :  { %672 = vmatprep.mubr.bf16.mxu0 %v3254_v0 }
  0xae   :  { %577 = vmatpush1.bf16.msra.mxu1 %v3637_v42  ;;  %643 = vmatpush1.bf16.msra.mxu0 %v3482_v8 }
  0xaf   :  { %578 = vmatprep.subr.bf16.mxu1 %v3642_v43  ;;  %644 = vmatprep.subr.bf16.mxu0 %v3491_v10 }
  0xb2   :  { %579 = vmatpush1.bf16.msra.mxu1 %v3651_v44  ;;  %645 = vmatpush1.bf16.msra.mxu0 %v3500_v13 }
  0xb3   :  { %580 = vmatprep.subr.bf16.mxu1 %v3657_v45  ;;  %646 = vmatprep.subr.bf16.mxu0 %v3511_v16 }
  0xb6   :  { %581 = vmatpush1.bf16.msra.mxu1 %v3666_v46  ;;  %647 = vmatpush1.bf16.msra.mxu0 %v3520_v19 }
  0xb7   :  { %582 = vmatprep.subr.bf16.mxu1 %v3671_v47  ;;  %648 = vmatprep.subr.bf16.mxu0 %v3529_v21 }
  0xba   :  { %583 = vmatpush1.bf16.msra.mxu1 %v3680_v48  ;;  %649 = vmatpush1.bf16.msra.mxu0 %v3538_v23 }
  0xbb   :  { %584 = vmatprep.subr.bf16.mxu1 %v3685_v49  ;;  %650 = vmatprep.subr.bf16.mxu0 %v3547_v25 }
  0xbe   :  { %585 = vmatpush1.bf16.msra.mxu1 %v3694_v50  ;;  %651 = vmatpush1.bf16.msra.mxu0 %v3558_v27 }
  0xbf   :  { %681 = vmatprep.subr.bf16.mxu1 %v3571_v30  ;;  %652 = vmatprep.subr.bf16.mxu0 %v3566_v29 }
  0xc1   :  { %603 = vmatmul.mubr.bf16.vlgmr.msra.gmra.mrb[8].mxu1 %v368_v40  ;;  %v174_v40 = vrot.slane %v157_v60, %v173_v24 }
  0xc2   :  { %682 = vmatpush1.bf16.msra.mxu1 %v3582_v32  ;;  %653 = vmatpush1.bf16.msra.mxu0 %v3577_v31 }
  0xc3   :  { %683 = vmatprep.subr.bf16.mxu1 %v3594_v34  ;;  %654 = vmatprep.subr.bf16.mxu0 %v3589_v33 }
  0xc4   :  { %713 = vmatprep.mubr.bf16.mxu1 %v3254_v0 }
  0xc6   :  { %684 = vmatpush1.bf16.msra.mxu1 %v3607_v36  ;;  %655 = vmatpush1.bf16.msra.mxu0 %v3600_v35 }
  0xc7   :  { %685 = vmatprep.subr.bf16.mxu1 %v3617_v38  ;;  %770 = vmatprep.subr.bf16.mxu0 %v3456_v2 }
  0xca   :  { %686 = vmatpush1.bf16.msra.mxu1 %v3622_v39 }
  0xcb   :  { %687 = vmatprep.subr.bf16.mxu1 %v3628_v41 }
  0xce   :  { %688 = vmatpush1.bf16.msra.mxu1 %v3637_v42 }
  0xcf   :  { %689 = vmatprep.subr.bf16.mxu1 %v3642_v43 }
  0xd2   :  { %690 = vmatpush1.bf16.msra.mxu1 %v3651_v44 }
  0xd3   :  { %691 = vmatprep.subr.bf16.mxu1 %v3657_v45 }
  0xd6   :  { %692 = vmatpush1.bf16.msra.mxu1 %v3666_v46 }
  0xd7   :  { %693 = vmatprep.subr.bf16.mxu1 %v3671_v47 }
  0xda   :  { %694 = vmatpush1.bf16.msra.mxu1 %v3680_v48 }
  0xdb   :  { %695 = vmatprep.subr.bf16.mxu1 %v3685_v49 }
  0xde   :  { %696 = vmatpush1.bf16.msra.mxu1 %v3694_v50 }
  0xdf   :  { %811 = vmatprep.subr.bf16.mxu1 %v3571_v30 }
 0x168   :  { %v286_v51 = vpop.f32.mrb[0].mxu1 }
 0x169   :  { %v288_v52 = vpop.f32.mrb[1].mxu1  ;;  %v3725_v5 = vadd.f32 %v286_v51, %v162_v1 }
 0x16a   :  { %v290_v53 = vpop.f32.mrb[2].mxu1  ;;  %v3727_v7 = vadd.f32 %v288_v52, %v166_v3 }
 0x16b   :  { %v291_v54 = vpop.f32.mrb[3].mxu1 }
 0x174   :  { %v327_v59 = vpop.f32.mrb[4].mxu1 }
 0x175   :  { %v329_v61 = vpop.f32.mrb[5].mxu1  ;;  %v3731_v52 = vadd.f32 %v327_v59, %v170_v28  ;;  %v367_v59 = vld [vmem:[%s4431_s2] sm:$0x1] }
 0x176   :  { %v331_v62 = vpop.f32.mrb[6].mxu1  ;;  %v3733_v54 = vadd.f32 %v329_v61, %v174_v40 }
 0x177   :  { %v332_v63 = vpop.f32.mrb[7].mxu1 }
 0x17c   :  { %v563_v9 = vpop.f32.mrb[0].mxu0 }
 0x17d   :  { %v565_v11 = vpop.f32.mrb[1].mxu0  ;;  %v611_v12 = vadd.f32 %v563_v9, %v3725_v5 }
 0x17e   :  { %v612_v14 = vadd.f32 %v565_v11, %v3727_v7  ;;  %v567_v15 = vpop.f32.mrb[2].mxu0 }
 0x17f   :  { %v568_v17 = vpop.f32.mrb[3].mxu0  ;;  %v2524_v20 = vmul.f32 -1.442695, %v611_v12 }
 0x180   :  { %v2525_v18 = vmul.f32 -1.442695, %v612_v14 }
 0x182   :  { %2829 = vpow2.f32 %v2525_v18 }
 0x183   :  { %2831 = vpow2.f32 %v2524_v20 }
 0x18c   :  { %v2830_v26 = vpop.eup %2829 }
 0x18d   :  { %v2832_v37 = vpop.eup %2831  ;;  %v625_v51 = vadd.f32 1.0, %v2830_v26 }
 0x18e   :  { %v624_v53 = vadd.f32 1.0, %v2832_v37 }
 0x18f   :  { %2833 = vrcp.f32 %v625_v51 }
 0x190   :  { %2835 = vrcp.f32 %v624_v53 }
 0x194   :  { %v604_v55 = vpop.f32.mrb[8].mxu1 }
 0x195   :  { %v613_v57 = vadd.f32 %v604_v55, %v3731_v52  ;;  %v606_v58 = vpop.f32.mrb[9].mxu1 }
 0x196   :  { %v614_v62 = vadd.f32 %v606_v58, %v3733_v54  ;;  %v608_v63 = vpop.f32.mrb[10].mxu1 }
 0x197   :  { %v2526_v56 = vmul.f32 -1.442695, %v613_v57  ;;  %v609_v1 = vpop.f32.mrb[11].mxu1 }
 0x198   :  { %2837 = vtanh.f32 %v614_v62 }
 0x199   :  { %2839 = vpow2.f32 %v2526_v56  ;;  %v2834_v60 = vpop.eup %2833 }
 0x19a   :  { %v2836_v61 = vpop.eup %2835  ;;  %v634_v11 = vmul.f32 %v2834_v60, %v367_v59 }
 0x1a2   :  { %v2838_v3 = vpop.eup %2837 }
 0x1a3   :  { %v2840_v9 = vpop.eup %2839  ;;  %v635_v12 = vmul.f32 %v2838_v3, %v2836_v61 }
 0x1a4   :  { %v626_v14 = vadd.f32 1.0, %v2840_v9 }
 0x1a5   :  { %v3740_v15 = vadd.f32 %v635_v12, %v634_v11 }
 0x1a6   :  { %2841 = vrcp.f32 %v626_v14 }
 0x1a7   :  { %2843 = vtanh.f32 %v3740_v15 }
 0x1b0   :  { %v2842_v17 = vpop.eup %2841 }
 0x1b1   :  { %v2844_v18 = vpop.eup %2843 }
 0x1b2   :  { %v3743_v20 = vmul.f32 %v2844_v18, %v2842_v17 }
 0x1b4   :  { %v639_v22 = vpack.c.bf16 %v3743_v20, %v3743_v20 }
 0x1b6   :  { %673 = vmatmul.mubr.bf16.vlgmr.msra.gmra.mrb[4].mxu0 %v639_v22  ;;  %714 = vmatmul.mubr.bf16.vlgmr.msra.gmra.mrb[12].mxu1 %v639_v22 }
 0x1b7   :  { %771 = vmatpush1.bf16.msra.mxu0 %v3464_v4  ;;  %812 = vmatpush1.bf16.msra.mxu1 %v3582_v32 }
 0x1b8   :  { %772 = vmatprep.subr.bf16.mxu0 %v3474_v6  ;;  %813 = vmatprep.subr.bf16.mxu1 %v3594_v34 }
 0x1b9   :  { %802 = vmatprep.mubr.bf16.mxu0 %v3254_v0  ;;  %843 = vmatprep.mubr.bf16.mxu1 %v3254_v0 }
 0x1bb   :  { %773 = vmatpush1.bf16.msra.mxu0 %v3482_v8  ;;  %814 = vmatpush1.bf16.msra.mxu1 %v3607_v36 }
 0x1bc   :  { %774 = vmatprep.subr.bf16.mxu0 %v3491_v10  ;;  %815 = vmatprep.subr.bf16.mxu1 %v3617_v38 }
 0x1bf   :  { %775 = vmatpush1.bf16.msra.mxu0 %v3500_v13  ;;  %816 = vmatpush1.bf16.msra.mxu1 %v3622_v39 }
 0x1c0   :  { %776 = vmatprep.subr.bf16.mxu0 %v3511_v16  ;;  %817 = vmatprep.subr.bf16.mxu1 %v3628_v41 }
 0x1c3   :  { %777 = vmatpush1.bf16.msra.mxu0 %v3520_v19  ;;  %818 = vmatpush1.bf16.msra.mxu1 %v3637_v42 }
 0x1c4   :  { %778 = vmatprep.subr.bf16.mxu0 %v3529_v21  ;;  %819 = vmatprep.subr.bf16.mxu1 %v3642_v43 }
 0x1c7   :  { %779 = vmatpush1.bf16.msra.mxu0 %v3538_v23  ;;  %820 = vmatpush1.bf16.msra.mxu1 %v3651_v44 }
 0x1c8   :  { %780 = vmatprep.subr.bf16.mxu0 %v3547_v25  ;;  %821 = vmatprep.subr.bf16.mxu1 %v3657_v45 }
 0x1cb   :  { %781 = vmatpush1.bf16.msra.mxu0 %v3558_v27  ;;  %822 = vmatpush1.bf16.msra.mxu1 %v3666_v46 }
 0x1cc   :  { %782 = vmatprep.subr.bf16.mxu0 %v3566_v29  ;;  %823 = vmatprep.subr.bf16.mxu1 %v3671_v47 }
 0x1cf   :  { %783 = vmatpush1.bf16.msra.mxu0 %v3577_v31  ;;  %824 = vmatpush1.bf16.msra.mxu1 %v3680_v48 }
 0x1d0   :  { %784 = vmatprep.subr.bf16.mxu0 %v3589_v33  ;;  %825 = vmatprep.subr.bf16.mxu1 %v3685_v49 }
 0x1d3   :  { %785 = vmatpush1.bf16.msra.mxu0 %v3600_v35  ;;  %826 = vmatpush1.bf16.msra.mxu1 %v3694_v50 }
 0x1d4   :  { %899 = vmatprep.subr.bf16.mxu0 %v3456_v2  ;;  %940 = vmatprep.subr.bf16.mxu1 %v3571_v30 }
 0x289   :  { %v674_v24 = vpop.f32.mrb[4].mxu0  ;;  %v715_v26 = vpop.f32.mrb[12].mxu1 }
 0x28a   :  { %v726_v28 = vrot.slane %v674_v24, 7  ;;  %v676_v37 = vpop.f32.mrb[5].mxu0  ;;  %v717_v40 = vpop.f32.mrb[13].mxu1  ;;  %v728_v60 = vrot.slane %v715_v26, 7  ;;  %v758_v26 = vrot.slane %v3740_v15, 7 }
 0x28b   :  { %v727_v51 = vrot.slane %v676_v37, 7  ;;  %v678_v53 = vpop.f32.mrb[6].mxu0  ;;  %v719_v55 = vpop.f32.mrb[14].mxu1  ;;  %v729_v59 = vrot.slane %v717_v40, 7 }
 0x28c   :  { %v734_v57 = vadd.f32 %v726_v28, %v3725_v5  ;;  %v679_v58 = vpop.f32.mrb[7].mxu0  ;;  %v720_v62 = vpop.f32.mrb[15].mxu1  ;;  %v736_v61 = vadd.f32 %v728_v60, %v3731_v52 }
 0x28d   :  { %v735_v63 = vadd.f32 %v727_v51, %v3727_v7  ;;  %v737_v3 = vadd.f32 %v729_v59, %v3733_v54 }
 0x28e   :  { %v2527_v56 = vmul.f32 -1.442695, %v734_v57  ;;  %v2529_v9 = vmul.f32 -1.442695, %v736_v61 }
 0x28f   :  { %v2528_v1 = vmul.f32 -1.442695, %v735_v63 }
 0x290   :  { %2845 = vpow2.f32 %v2527_v56 }
 0x291   :  { %2847 = vpow2.f32 %v2528_v1 }
 0x292   :  { %2849 = vtanh.f32 %v737_v3 }
 0x293   :  { %2851 = vpow2.f32 %v2529_v9 }
 0x29a   :  { %v2846_v11 = vpop.eup %2845 }
 0x29b   :  { %v747_v12 = vadd.f32 1.0, %v2846_v11  ;;  %v2848_v14 = vpop.eup %2847 }
 0x29c   :  { %v748_v17 = vadd.f32 1.0, %v2848_v14  ;;  %v2850_v18 = vpop.eup %2849 }
 0x29d   :  { %2853 = vrcp.f32 %v747_v12  ;;  %v2852_v22 = vpop.eup %2851 }
 0x29e   :  { %2855 = vrcp.f32 %v748_v17  ;;  %v749_v40 = vadd.f32 1.0, %v2852_v22 }
 0x2a0   :  { %2857 = vrcp.f32 %v749_v40 }
 0x2a7   :  { %v2854_v24 = vpop.eup %2853 }
 0x2a8   :  { %v761_v28 = vmul.f32 %v2854_v24, %v2850_v18  ;;  %v2856_v37 = vpop.eup %2855 }
 0x2a9   :  { %v760_v51 = vmul.f32 %v2856_v37, %v758_v26 }
 0x2aa   :  { %v2858_v55 = vpop.eup %2857 }
 0x2ab   :  { %v3786_v53 = vadd.f32 %v761_v28, %v760_v51 }
 0x2ad   :  { %2859 = vtanh.f32 %v3786_v53 }
 0x2b7   :  { %v2860_v57 = vpop.eup %2859 }
 0x2b8   :  { %v3789_v58 = vmul.f32 %v2860_v57, %v2858_v55 }
 0x2ba   :  { %v765_v62 = vpack.c.bf16 %v3789_v58, %v3789_v58 }
 0x2bc   :  { %v767_v63 = vshrl.u32 %v765_v62, 16 }
 0x2be   :  { %803 = vmatmul.mubr.bf16.vlgmr.msra.gmra.mrb[8].mxu0 %v767_v63  ;;  %844 = vmatmul.mubr.bf16.vlgmr.msra.gmra.mrb[16].mxu1 %v767_v63 }
 0x2bf   :  { %900 = vmatpush1.bf16.msra.mxu0 %v3464_v4  ;;  %941 = vmatpush1.bf16.msra.mxu1 %v3582_v32 }
 0x2c0   :  { %901 = vmatprep.subr.bf16.mxu0 %v3474_v6  ;;  %942 = vmatprep.subr.bf16.mxu1 %v3594_v34 }
 0x2c1   :  { %931 = vmatprep.mubr.bf16.mxu0 %v3254_v0  ;;  %972 = vmatprep.mubr.bf16.mxu1 %v3254_v0 }
 0x2c3   :  { %902 = vmatpush1.bf16.msra.mxu0 %v3482_v8  ;;  %943 = vmatpush1.bf16.msra.mxu1 %v3607_v36 }
 0x2c4   :  { %903 = vmatprep.subr.bf16.mxu0 %v3491_v10  ;;  %944 = vmatprep.subr.bf16.mxu1 %v3617_v38 }
 0x2c7   :  { %904 = vmatpush1.bf16.msra.mxu0 %v3500_v13  ;;  %945 = vmatpush1.bf16.msra.mxu1 %v3622_v39 }
 0x2c8   :  { %905 = vmatprep.subr.bf16.mxu0 %v3511_v16  ;;  %946 = vmatprep.subr.bf16.mxu1 %v3628_v41 }
 0x2cb   :  { %906 = vmatpush1.bf16.msra.mxu0 %v3520_v19  ;;  %947 = vmatpush1.bf16.msra.mxu1 %v3637_v42 }
 0x2cc   :  { %907 = vmatprep.subr.bf16.mxu0 %v3529_v21  ;;  %948 = vmatprep.subr.bf16.mxu1 %v3642_v43 }
 0x2cf   :  { %908 = vmatpush1.bf16.msra.mxu0 %v3538_v23  ;;  %949 = vmatpush1.bf16.msra.mxu1 %v3651_v44 }
 0x2d0   :  { %909 = vmatprep.subr.bf16.mxu0 %v3547_v25  ;;  %950 = vmatprep.subr.bf16.mxu1 %v3657_v45 }
 0x2d3   :  { %910 = vmatpush1.bf16.msra.mxu0 %v3558_v27  ;;  %951 = vmatpush1.bf16.msra.mxu1 %v3666_v46 }
 0x2d4   :  { %911 = vmatprep.subr.bf16.mxu0 %v3566_v29  ;;  %952 = vmatprep.subr.bf16.mxu1 %v3671_v47 }
 0x2d7   :  { %912 = vmatpush1.bf16.msra.mxu0 %v3577_v31  ;;  %953 = vmatpush1.bf16.msra.mxu1 %v3680_v48 }
 0x2d8   :  { %913 = vmatprep.subr.bf16.mxu0 %v3589_v33  ;;  %954 = vmatprep.subr.bf16.mxu1 %v3685_v49 }
 0x2db   :  { %914 = vmatpush1.bf16.msra.mxu0 %v3600_v35  ;;  %955 = vmatpush1.bf16.msra.mxu1 %v3694_v50 }
 0x2dc   :  { %1030 = vmatprep.subr.bf16.mxu0 %v3456_v2  ;;  %1071 = vmatprep.subr.bf16.mxu1 %v3571_v30 }
 0x391   :  { %v804_v15 = vpop.f32.mrb[8].mxu0  ;;  %v845_v56 = vpop.f32.mrb[16].mxu1 }
 0x392   :  { %v856_v1 = vrot.slane %v804_v15, 6  ;;  %v806_v60 = vpop.f32.mrb[9].mxu0  ;;  %v847_v59 = vpop.f32.mrb[17].mxu1  ;;  %v858_v2 = vrot.slane %v845_v56, 6  ;;  %v888_v56 = vrot.slane %v3786_v53, 7 }
 0x393   :  { %v857_v61 = vrot.slane %v806_v60, 6  ;;  %v808_v3 = vpop.f32.mrb[10].mxu0  ;;  %v849_v9 = vpop.f32.mrb[18].mxu1  ;;  %v859_v24 = vrot.slane %v847_v59, 6 }
 0x394   :  { %v864_v11 = vadd.f32 %v856_v1, %v3725_v5  ;;  %v809_v12 = vpop.f32.mrb[11].mxu0  ;;  %v850_v14 = vpop.f32.mrb[19].mxu1  ;;  %v866_v26 = vadd.f32 %v858_v2, %v3731_v52 }
 0x395   :  { %v865_v17 = vadd.f32 %v857_v61, %v3727_v7  ;;  %v867_v28 = vadd.f32 %v859_v24, %v3733_v54  ;;  %v1545_v14 = vsel %vm1544_vm2, %v3743_v20, %v3789_v58 }
 0x396   :  { %v2530_v18 = vmul.f32 -1.442695, %v864_v11  ;;  %v2532_v37 = vmul.f32 -1.442695, %v866_v26 }
 0x397   :  { %v2531_v22 = vmul.f32 -1.442695, %v865_v17 }
 0x398   :  { %2861 = vpow2.f32 %v2530_v18 }
 0x399   :  { %2863 = vpow2.f32 %v2531_v22 }
 0x39a   :  { %2865 = vtanh.f32 %v867_v28 }
 0x39b   :  { %2867 = vpow2.f32 %v2532_v37 }
 0x3a2   :  { %v2862_v40 = vpop.eup %2861 }
 0x3a3   :  { %v877_v51 = vadd.f32 1.0, %v2862_v40  ;;  %v2864_v55 = vpop.eup %2863 }
 0x3a4   :  { %v878_v57 = vadd.f32 1.0, %v2864_v55  ;;  %v2866_v62 = vpop.eup %2865 }
 0x3a5   :  { %2869 = vrcp.f32 %v877_v51  ;;  %v2868_v63 = vpop.eup %2867 }
 0x3a6   :  { %2871 = vrcp.f32 %v878_v57  ;;  %v879_v59 = vadd.f32 1.0, %v2868_v63 }
 0x3a8   :  { %2873 = vrcp.f32 %v879_v59 }
 0x3af   :  { %v2870_v15 = vpop.eup %2869 }
 0x3b0   :  { %v891_v1 = vmul.f32 %v2870_v15, %v2866_v62  ;;  %v2872_v60 = vpop.eup %2871 }
 0x3b1   :  { %v890_v61 = vmul.f32 %v2872_v60, %v888_v56 }
 0x3b2   :  { %v2874_v9 = vpop.eup %2873 }
 0x3b3   :  { %v3832_v3 = vadd.f32 %v891_v1, %v890_v61 }
 0x3b5   :  { %2875 = vtanh.f32 %v3832_v3  ;;  %v1017_v63 = vrot.slane %v3832_v3, 7  ;;  %v3892_v3 = vld [vmem:[%s4436_s7] ss:$16 sps:$4 sm:$0xff]  }
 0x3bf   :  { %v2876_v11 = vpop.eup %2875 }
 0x3c0   :  { %v894_v12 = vmul.f32 %v2876_v11, %v2874_v9 }
 0x3c2   :  { %v895_v17 = vpack.c.bf16 %v894_v12, %v894_v12  ;;  %v3837_v18 = vsel %vm1546_vm3, %v1545_v14, %v894_v12 }
 0x3c4   :  { %v897_v53 = vrot.slane %v895_v17, 1 }
 0x3c6   :  { %932 = vmatmul.mubr.bf16.vlgmr.msra.gmra.mrb[12].mxu0 %v897_v53  ;;  %973 = vmatmul.mubr.bf16.vlgmr.msra.gmra.mrb[20].mxu1 %v897_v53 }
 0x3c7   :  { %1031 = vmatpush1.bf16.msra.mxu0 %v3464_v4  ;;  %1072 = vmatpush1.bf16.msra.mxu1 %v3582_v32  ;;  %v3874_v4 = vld [vmem:[%s4436_s7 + $0x4] ss:$16 sps:$4 sm:$0xff]  }
 0x3c8   :  { %1032 = vmatprep.subr.bf16.mxu0 %v3474_v6  ;;  %1073 = vmatprep.subr.bf16.mxu1 %v3594_v34 }
 0x3c9   :  { %1062 = vmatprep.mubr.bf16.mxu0 %v3254_v0  ;;  %1103 = vmatprep.mubr.bf16.mxu1 %v3254_v0 }
 0x3cb   :  { %1033 = vmatpush1.bf16.msra.mxu0 %v3482_v8  ;;  %1074 = vmatpush1.bf16.msra.mxu1 %v3607_v36 }
 0x3cc   :  { %1034 = vmatprep.subr.bf16.mxu0 %v3491_v10  ;;  %1075 = vmatprep.subr.bf16.mxu1 %v3617_v38 }
 0x3cf   :  { %1035 = vmatpush1.bf16.msra.mxu0 %v3500_v13  ;;  %1076 = vmatpush1.bf16.msra.mxu1 %v3622_v39 }
 0x3d0   :  { %1036 = vmatprep.subr.bf16.mxu0 %v3511_v16  ;;  %1077 = vmatprep.subr.bf16.mxu1 %v3628_v41 }
 0x3d3   :  { %1037 = vmatpush1.bf16.msra.mxu0 %v3520_v19  ;;  %1078 = vmatpush1.bf16.msra.mxu1 %v3637_v42 }
 0x3d4   :  { %1038 = vmatprep.subr.bf16.mxu0 %v3529_v21  ;;  %1079 = vmatprep.subr.bf16.mxu1 %v3642_v43 }
 0x3d7   :  { %1039 = vmatpush1.bf16.msra.mxu0 %v3538_v23  ;;  %1080 = vmatpush1.bf16.msra.mxu1 %v3651_v44 }
 0x3d8   :  { %1040 = vmatprep.subr.bf16.mxu0 %v3547_v25  ;;  %1081 = vmatprep.subr.bf16.mxu1 %v3657_v45 }
 0x3db   :  { %1041 = vmatpush1.bf16.msra.mxu0 %v3558_v27  ;;  %1082 = vmatpush1.bf16.msra.mxu1 %v3666_v46 }
 0x3dc   :  { %1042 = vmatprep.subr.bf16.mxu0 %v3566_v29  ;;  %1083 = vmatprep.subr.bf16.mxu1 %v3671_v47 }
 0x3df   :  { %1043 = vmatpush1.bf16.msra.mxu0 %v3577_v31  ;;  %1084 = vmatpush1.bf16.msra.mxu1 %v3680_v48 }
 0x3e0   :  { %1044 = vmatprep.subr.bf16.mxu0 %v3589_v33  ;;  %1085 = vmatprep.subr.bf16.mxu1 %v3685_v49 }
 0x3e3   :  { %1045 = vmatpush1.bf16.msra.mxu0 %v3600_v35  ;;  %1086 = vmatpush1.bf16.msra.mxu1 %v3694_v50 }
 0x3e4   :  { %1159 = vmatprep.subr.bf16.mxu0 %v3874_v4  ;;  %1200 = vmatprep.subr.bf16.mxu1 %v3571_v30 }
 0x499   :  { %v933_v6 = vpop.f32.mrb[12].mxu0  ;;  %v974_v8 = vpop.f32.mrb[20].mxu1 }
 0x49a   :  { %v985_v10 = vrot.slane %v933_v6, 5  ;;  %v935_v13 = vpop.f32.mrb[13].mxu0  ;;  %v976_v16 = vpop.f32.mrb[21].mxu1  ;;  %v987_v22 = vrot.slane %v974_v8, 5  ;;  %v3899_v6 = vld [vmem:[%s4436_s7 + $0x24] ss:$16 sps:$4 sm:$0xff]  }
 0x49b   :  { %v986_v19 = vrot.slane %v935_v13, 5  ;;  %v937_v21 = vpop.f32.mrb[14].mxu0  ;;  %v978_v23 = vpop.f32.mrb[22].mxu1  ;;  %v988_v30 = vrot.slane %v976_v16, 5 }
 0x49c   :  { %v993_v25 = vadd.f32 %v985_v10, %v3725_v5  ;;  %v938_v27 = vpop.f32.mrb[15].mxu0  ;;  %v979_v29 = vpop.f32.mrb[23].mxu1  ;;  %v995_v2 = vadd.f32 %v987_v22, %v3731_v52 }
 0x49d   :  { %v994_v31 = vadd.f32 %v986_v19, %v3727_v7  ;;  %v996_v24 = vadd.f32 %v988_v30, %v3733_v54 }
 0x49e   :  { %v2533_v20 = vmul.f32 -1.442695, %v993_v25  ;;  %v2535_v26 = vmul.f32 -1.442695, %v995_v2 }
 0x49f   :  { %v2534_v58 = vmul.f32 -1.442695, %v994_v31 }
 0x4a0   :  { %2877 = vpow2.f32 %v2533_v20 }
 0x4a1   :  { %2879 = vpow2.f32 %v2534_v58 }
 0x4a2   :  { %2881 = vtanh.f32 %v996_v24 }
 0x4a3   :  { %2883 = vpow2.f32 %v2535_v26 }
 0x4aa   :  { %v2878_v28 = vpop.eup %2877 }
 0x4ab   :  { %v1006_v37 = vadd.f32 1.0, %v2878_v28  ;;  %v2880_v40 = vpop.eup %2879 }
 0x4ac   :  { %v1007_v51 = vadd.f32 1.0, %v2880_v40  ;;  %v2882_v55 = vpop.eup %2881 }
 0x4ad   :  { %2885 = vrcp.f32 %v1006_v37  ;;  %v2884_v57 = vpop.eup %2883 }
 0x4ae   :  { %2887 = vrcp.f32 %v1007_v51  ;;  %v1008_v1 = vadd.f32 1.0, %v2884_v57 }
 0x4b0   :  { %2889 = vrcp.f32 %v1008_v1 }
 0x4b7   :  { %v2886_v62 = vpop.eup %2885 }
 0x4b8   :  { %v1020_v15 = vmul.f32 %v2886_v62, %v2882_v55  ;;  %v2888_v56 = vpop.eup %2887 }
 0x4b9   :  { %v1019_v60 = vmul.f32 %v2888_v56, %v1017_v63 }
 0x4ba   :  { %v2890_v61 = vpop.eup %2889 }
 0x4bb   :  { %v3883_v59 = vadd.f32 %v1020_v15, %v1019_v60 }
 0x4bd   :  { %2891 = vtanh.f32 %v3883_v59  ;;  %v1148_v62 = vrot.slane %v3883_v59, 7  ;;  %v4008_v59 = vld [vmem:[%s4436_s7 + $0x8] ss:$16 sps:$4 sm:$0xff]  }
 0x4c7   :  { %v2892_v9 = vpop.eup %2891 }
 0x4c8   :  { %v1023_v11 = vmul.f32 %v2892_v9, %v2890_v61 }
 0x4ca   :  { %v1024_v12 = vpack.c.bf16 %v1023_v11, %v1023_v11  ;;  %v3887_v14 = vsel %vm1548_vm4, %v3837_v18, %v1023_v11  ;;  %v3908_v18 = vld [vmem:[%s4436_s7 + $0x20] ss:$16 sps:$4 sm:$0xff]  }
 0x4cc   :  { %v1026_v17 = vshrl.u32 %v1024_v12, 16 }
 0x4ce   :  { %v1028_v53 = vrot.slane %v1026_v17, 1 }
 0x4d0   :  { %1063 = vmatmul.mubr.bf16.vlgmr.msra.gmra.mrb[16].mxu0 %v1028_v53  ;;  %1104 = vmatmul.mubr.bf16.vlgmr.msra.gmra.mrb[24].mxu1 %v1028_v53 }
 0x4d1   :  { %1160 = vmatpush1.bf16.msra.mxu0 %v3892_v3  ;;  %1201 = vmatpush1.bf16.msra.mxu1 %v3582_v32  ;;  %v3915_v32 = vld [vmem:[%s4436_s7 + $0x44] ss:$16 sps:$4 sm:$0xff]  }
 0x4d2   :  { %1161 = vmatprep.subr.bf16.mxu0 %v3899_v6  ;;  %1202 = vmatprep.subr.bf16.mxu1 %v3594_v34  ;;  %v3922_v34 = vld [vmem:[%s4436_s7 + $0x40] ss:$16 sps:$4 sm:$0xff]  }
 0x4d3   :  { %1191 = vmatprep.mubr.bf16.mxu0 %v3254_v0  ;;  %1232 = vmatprep.mubr.bf16.mxu1 %v3254_v0 }
 0x4d5   :  { %1162 = vmatpush1.bf16.msra.mxu0 %v3908_v18  ;;  %1203 = vmatpush1.bf16.msra.mxu1 %v3607_v36  ;;  %v3929_v36 = vld [vmem:[%s4436_s7 + $0x64] ss:$16 sps:$4 sm:$0xff]  }
 0x4d6   :  { %1163 = vmatprep.subr.bf16.mxu0 %v3915_v32  ;;  %1204 = vmatprep.subr.bf16.mxu1 %v3617_v38  ;;  %v3936_v38 = vld [vmem:[%s4436_s7 + $0x60] ss:$16 sps:$4 sm:$0xff]  }
 0x4d9   :  { %1164 = vmatpush1.bf16.msra.mxu0 %v3922_v34  ;;  %1205 = vmatpush1.bf16.msra.mxu1 %v3622_v39  ;;  %v3943_v39 = vld [vmem:[%s4436_s7 + $0x84] ss:$16 sps:$4 sm:$0xff]  }
 0x4da   :  { %1165 = vmatprep.subr.bf16.mxu0 %v3929_v36  ;;  %1206 = vmatprep.subr.bf16.mxu1 %v3628_v41  ;;  %v3950_v41 = vld [vmem:[%s4436_s7 + $0x80] ss:$16 sps:$4 sm:$0xff]  }
 0x4dd   :  { %1166 = vmatpush1.bf16.msra.mxu0 %v3936_v38  ;;  %1207 = vmatpush1.bf16.msra.mxu1 %v3637_v42  ;;  %v3957_v42 = vld [vmem:[%s4436_s7 + $0xa4] ss:$16 sps:$4 sm:$0xff]  }
 0x4de   :  { %1167 = vmatprep.subr.bf16.mxu0 %v3943_v39  ;;  %1208 = vmatprep.subr.bf16.mxu1 %v3642_v43  ;;  %v3964_v43 = vld [vmem:[%s4436_s7 + $0xa0] ss:$16 sps:$4 sm:$0xff]  }
 0x4e1   :  { %1168 = vmatpush1.bf16.msra.mxu0 %v3950_v41  ;;  %1209 = vmatpush1.bf16.msra.mxu1 %v3651_v44  ;;  %v3971_v44 = vld [vmem:[%s4436_s7 + $0xc4] ss:$16 sps:$4 sm:$0xff]  }
 0x4e2   :  { %1169 = vmatprep.subr.bf16.mxu0 %v3957_v42  ;;  %1210 = vmatprep.subr.bf16.mxu1 %v3657_v45  ;;  %v3978_v45 = vld [vmem:[%s4436_s7 + $0xc0] ss:$16 sps:$4 sm:$0xff]  }
 0x4e5   :  { %1170 = vmatpush1.bf16.msra.mxu0 %v3964_v43  ;;  %1211 = vmatpush1.bf16.msra.mxu1 %v3666_v46  ;;  %v3990_v46 = vld [vmem:[%s4436_s7 + $0xc] ss:$16 sps:$4 sm:$0xff]  }
 0x4e6   :  { %1171 = vmatprep.subr.bf16.mxu0 %v3971_v44  ;;  %1212 = vmatprep.subr.bf16.mxu1 %v3671_v47 }
 0x4e9   :  { %1172 = vmatpush1.bf16.msra.mxu0 %v3978_v45  ;;  %1213 = vmatpush1.bf16.msra.mxu1 %v3680_v48 }
 0x4ea   :  { %1173 = vmatprep.subr.bf16.mxu0 %v3589_v33  ;;  %1214 = vmatprep.subr.bf16.mxu1 %v3685_v49 }
 0x4ed   :  { %1174 = vmatpush1.bf16.msra.mxu0 %v3600_v35  ;;  %1215 = vmatpush1.bf16.msra.mxu1 %v3694_v50 }
 0x4ee   :  { %1290 = vmatprep.subr.bf16.mxu0 %v3874_v4  ;;  %1331 = vmatprep.subr.bf16.mxu1 %v3990_v46 }
 0x5a3   :  { %v1064_v8 = vpop.f32.mrb[16].mxu0  ;;  %v1105_v10 = vpop.f32.mrb[24].mxu1 }
 0x5a4   :  { %v1116_v13 = vrot.slane %v1064_v8, 4  ;;  %v1066_v16 = vpop.f32.mrb[17].mxu0  ;;  %v1107_v33 = vpop.f32.mrb[25].mxu1  ;;  %v1118_v58 = vrot.slane %v1105_v10, 4  ;;  %v4015_v8 = vld [vmem:[%s4436_s7 + $0x2c] ss:$16 sps:$4 sm:$0xff]  }
 0x5a5   :  { %v1117_v19 = vrot.slane %v1066_v16, 4  ;;  %v1068_v21 = vpop.f32.mrb[18].mxu0  ;;  %v1109_v23 = vpop.f32.mrb[26].mxu1  ;;  %v1119_v22 = vrot.slane %v1107_v33, 4  ;;  %v4031_v10 = vld [vmem:[%s4436_s7 + $0x4c] ss:$16 sps:$4 sm:$0xff]  }
 0x5a6   :  { %v1124_v35 = vadd.f32 %v1116_v13, %v3725_v5  ;;  %v1069_v25 = vpop.f32.mrb[19].mxu0  ;;  %v1110_v27 = vpop.f32.mrb[27].mxu1  ;;  %v1126_v30 = vadd.f32 %v1118_v58, %v3731_v52  ;;  %v4038_v13 = vld [vmem:[%s4436_s7 + $0x48] ss:$16 sps:$4 sm:$0xff]   ;;  %v4045_v16 = vld [vmem:[%s4436_s7 + $0x6c] ss:$16 sps:$4 sm:$0xff]  }
 0x5a7   :  { %v1125_v29 = vadd.f32 %v1117_v19, %v3727_v7  ;;  %v1127_v2 = vadd.f32 %v1119_v22, %v3733_v54  ;;  %v4052_v33 = vld [vmem:[%s4436_s7 + $0x68] ss:$16 sps:$4 sm:$0xff]   ;;  %v4059_v19 = vld [vmem:[%s4436_s7 + $0x8c] ss:$16 sps:$4 sm:$0xff]   ;;  %v4090_v25 = vld [vmem:[%s4436_s7 + $0xe4] ss:$16 sps:$4 sm:$0xff]  }
 0x5a8   :  { %v2536_v31 = vmul.f32 -1.442695, %v1124_v35  ;;  %v2538_v24 = vmul.f32 -1.442695, %v1126_v30  ;;  %v4066_v21 = vld [vmem:[%s4436_s7 + $0x88] ss:$16 sps:$4 sm:$0xff]  }
 0x5a9   :  { %v2537_v20 = vmul.f32 -1.442695, %v1125_v29  ;;  %v4073_v23 = vld [vmem:[%s4436_s7 + $0xac] ss:$16 sps:$4 sm:$0xff]   ;;  %v4080_v35 = vld [vmem:[%s4436_s7 + $0xa8] ss:$16 sps:$4 sm:$0xff]  }
 0x5aa   :  { %2893 = vpow2.f32 %v2536_v31  ;;  %v4097_v27 = vld [vmem:[%s4436_s7 + $0xe0] ss:$16 sps:$4 sm:$0xff]  }
 0x5ab   :  { %2895 = vpow2.f32 %v2537_v20 }
 0x5ac   :  { %2897 = vtanh.f32 %v1127_v2 }
 0x5ad   :  { %2899 = vpow2.f32 %v2538_v24 }
 0x5b4   :  { %v2894_v26 = vpop.eup %2893 }
 0x5b5   :  { %v1137_v28 = vadd.f32 1.0, %v2894_v26  ;;  %v2896_v37 = vpop.eup %2895 }
 0x5b6   :  { %v1138_v40 = vadd.f32 1.0, %v2896_v37  ;;  %v2898_v51 = vpop.eup %2897 }
 0x5b7   :  { %2901 = vrcp.f32 %v1137_v28  ;;  %v2900_v55 = vpop.eup %2899 }
 0x5b8   :  { %2903 = vrcp.f32 %v1138_v40  ;;  %v1139_v56 = vadd.f32 1.0, %v2900_v55 }
 0x5ba   :  { %2905 = vrcp.f32 %v1139_v56 }
 0x5c1   :  { %v2902_v57 = vpop.eup %2901 }
 0x5c2   :  { %v1151_v63 = vmul.f32 %v2902_v57, %v2898_v51  ;;  %v2904_v15 = vpop.eup %2903 }
 0x5c3   :  { %v1150_v1 = vmul.f32 %v2904_v15, %v1148_v62 }
 0x5c4   :  { %v2906_v61 = vpop.eup %2905 }
 0x5c5   :  { %v3998_v60 = vadd.f32 %v1151_v63, %v1150_v1 }
 0x5c7   :  { %2907 = vtanh.f32 %v3998_v60 }
 0x5d1   :  { %v2908_v9 = vpop.eup %2907 }
 0x5d2   :  { %v1154_v11 = vmul.f32 %v2908_v9, %v2906_v61  ;;  %v1277_v61 = vrot.slane %v3998_v60, 7 }
 0x5d4   :  { %v1155_v12 = vpack.c.bf16 %v1154_v11, %v1154_v11  ;;  %v4002_v17 = vsel %vm1550_vm5, %v3887_v14, %v1154_v11  ;;  %v4024_v14 = vld [vmem:[%s4436_s7 + $0x28] ss:$16 sps:$4 sm:$0xff]  }
 0x5d6   :  { %v1157_v53 = vrot.slane %v1155_v12, 2 }
 0x5d8   :  { %1192 = vmatmul.mubr.bf16.vlgmr.msra.gmra.mrb[20].mxu0 %v1157_v53  ;;  %1233 = vmatmul.mubr.bf16.vlgmr.msra.gmra.mrb[28].mxu1 %v1157_v53 }
 0x5d9   :  { %1291 = vmatpush1.bf16.msra.mxu0 %v3892_v3  ;;  %1332 = vmatpush1.bf16.msra.mxu1 %v4008_v59 }
 0x5da   :  { %1292 = vmatprep.subr.bf16.mxu0 %v3899_v6  ;;  %1333 = vmatprep.subr.bf16.mxu1 %v4015_v8 }
 0x5db   :  { %1322 = vmatprep.mubr.bf16.mxu0 %v3254_v0  ;;  %1363 = vmatprep.mubr.bf16.mxu1 %v3254_v0 }
 0x5dd   :  { %1293 = vmatpush1.bf16.msra.mxu0 %v3908_v18  ;;  %1334 = vmatpush1.bf16.msra.mxu1 %v4024_v14 }
 0x5de   :  { %1294 = vmatprep.subr.bf16.mxu0 %v3915_v32  ;;  %1335 = vmatprep.subr.bf16.mxu1 %v4031_v10 }
 0x5e1   :  { %1295 = vmatpush1.bf16.msra.mxu0 %v3922_v34  ;;  %1336 = vmatpush1.bf16.msra.mxu1 %v4038_v13 }
 0x5e2   :  { %1296 = vmatprep.subr.bf16.mxu0 %v3929_v36  ;;  %1337 = vmatprep.subr.bf16.mxu1 %v4045_v16 }
 0x5e5   :  { %1297 = vmatpush1.bf16.msra.mxu0 %v3936_v38  ;;  %1338 = vmatpush1.bf16.msra.mxu1 %v4052_v33 }
 0x5e6   :  { %1298 = vmatprep.subr.bf16.mxu0 %v3943_v39  ;;  %1339 = vmatprep.subr.bf16.mxu1 %v4059_v19 }
 0x5e9   :  { %1299 = vmatpush1.bf16.msra.mxu0 %v3950_v41  ;;  %1340 = vmatpush1.bf16.msra.mxu1 %v4066_v21 }
 0x5ea   :  { %1300 = vmatprep.subr.bf16.mxu0 %v3957_v42  ;;  %1341 = vmatprep.subr.bf16.mxu1 %v4073_v23 }
 0x5ed   :  { %1301 = vmatpush1.bf16.msra.mxu0 %v3964_v43  ;;  %1342 = vmatpush1.bf16.msra.mxu1 %v4080_v35 }
 0x5ee   :  { %1302 = vmatprep.subr.bf16.mxu0 %v3971_v44  ;;  %1343 = vmatprep.subr.bf16.mxu1 %v3671_v47 }
 0x5f1   :  { %1303 = vmatpush1.bf16.msra.mxu0 %v3978_v45  ;;  %1344 = vmatpush1.bf16.msra.mxu1 %v3680_v48 }
 0x5f2   :  { %1304 = vmatprep.subr.bf16.mxu0 %v4090_v25  ;;  %1345 = vmatprep.subr.bf16.mxu1 %v3685_v49 }
 0x5f5   :  { %1305 = vmatpush1.bf16.msra.mxu0 %v4097_v27  ;;  %1346 = vmatpush1.bf16.msra.mxu1 %v3694_v50 }
 0x5f6   :  { %1419 = vmatprep.subr.bf16.mxu0 %v3874_v4  ;;  %1460 = vmatprep.subr.bf16.mxu1 %v3990_v46 }
 0x6ab   :  { %v1193_v47 = vpop.f32.mrb[20].mxu0  ;;  %v1234_v48 = vpop.f32.mrb[28].mxu1 }
 0x6ac   :  { %v1245_v29 = vrot.slane %v1193_v47, 3  ;;  %v1195_v31 = vpop.f32.mrb[21].mxu0  ;;  %v1236_v20 = vpop.f32.mrb[29].mxu1  ;;  %v1247_v4 = vrot.slane %v1234_v48, 3 }
 0x6ad   :  { %v1246_v58 = vrot.slane %v1195_v31, 3  ;;  %v1197_v49 = vpop.f32.mrb[22].mxu0  ;;  %v1238_v22 = vpop.f32.mrb[30].mxu1  ;;  %v1248_v46 = vrot.slane %v1236_v20, 3 }
 0x6ae   :  { %v1253_v30 = vadd.f32 %v1245_v29, %v3725_v5  ;;  %v1198_v2 = vpop.f32.mrb[23].mxu0  ;;  %v1239_v24 = vpop.f32.mrb[31].mxu1  ;;  %v1255_v37 = vadd.f32 %v1247_v4, %v3731_v52 }
 0x6af   :  { %v1254_v26 = vadd.f32 %v1246_v58, %v3727_v7  ;;  %v1256_v40 = vadd.f32 %v1248_v46, %v3733_v54 }
 0x6b0   :  { %v2539_v28 = vmul.f32 -1.442695, %v1253_v30  ;;  %v2541_v51 = vmul.f32 -1.442695, %v1255_v37 }
 0x6b1   :  { %v2540_v50 = vmul.f32 -1.442695, %v1254_v26 }
 0x6b2   :  { %2909 = vpow2.f32 %v2539_v28 }
 0x6b3   :  { %2911 = vpow2.f32 %v2540_v50 }
 0x6b4   :  { %2913 = vtanh.f32 %v1256_v40 }
 0x6b5   :  { %2915 = vpow2.f32 %v2541_v51 }
 0x6bc   :  { %v2910_v55 = vpop.eup %2909 }
 0x6bd   :  { %v1266_v57 = vadd.f32 1.0, %v2910_v55  ;;  %v2912_v62 = vpop.eup %2911 }
 0x6be   :  { %v1267_v63 = vadd.f32 1.0, %v2912_v62  ;;  %v2914_v15 = vpop.eup %2913 }
 0x6bf   :  { %2917 = vrcp.f32 %v1266_v57  ;;  %v2916_v56 = vpop.eup %2915 }
 0x6c0   :  { %2919 = vrcp.f32 %v1267_v63  ;;  %v1268_v12 = vadd.f32 1.0, %v2916_v56  ;;  %v2783_v63 = vld [vmem:[%s4438_s9] sm:$0xff]   ;;  %v2784_v56 = vld [vmem:[%s4438_s9 + $0x8] sm:$0xff]  }
 0x6c2   :  { %2921 = vrcp.f32 %v1268_v12  ;;  %v2789_v12 = vld [vmem:[%s4438_s9 + $0x30] sm:$0xff]  }
 0x6c9   :  { %v2918_v1 = vpop.eup %2917 }
 0x6ca   :  { %v1280_v9 = vmul.f32 %v2918_v1, %v2914_v15  ;;  %v2920_v11 = vpop.eup %2919  ;;  %v3255_v15 = vmov 0.0   ;;  %v2785_v1 = vld [vmem:[%s4438_s9 + $0x10] sm:$0xff]  }
 0x6cb   :  { %v1279_v53 = vmul.f32 %v2920_v11, %v1277_v61  ;;  %v2786_v61 = vld [vmem:[%s4438_s9 + $0x18] sm:$0xff]   ;;  %v2788_v11 = vld [vmem:[%s4438_s9 + $0x28] sm:$0xff]  }
 0x6cc   :  { %v2922_v48 = vpop.eup %2921 }
 0x6cd   :  { %v4108_v47 = vadd.f32 %v1280_v9, %v1279_v53  ;;  %v2787_v9 = vld [vmem:[%s4438_s9 + $0x20] sm:$0xff]   ;;  %v2790_v53 = vld [vmem:[%s4438_s9 + $0x38] sm:$0xff]  }
 0x6cf   :  { %2923 = vtanh.f32 %v4108_v47  ;;  %v1408_v24 = vrot.slane %v4108_v47, 7  ;;  %v2791_v47 = vld [vmem:[%s4441_s12 + $0x40] sm:$0xff]  }
 0x6d9   :  { %v2924_v29 = vpop.eup %2923 }
 0x6da   :  { %v1283_v31 = vmul.f32 %v2924_v29, %v2922_v48  ;;  %v2792_v48 = vld [vmem:[%s4441_s12] sm:$0xff]   ;;  %v2793_v29 = vld [vmem:[%s4441_s12 + $0x48] sm:$0xff]  }
 0x6dc   :  { %v1284_v20 = vpack.c.bf16 %v1283_v31, %v1283_v31  ;;  %v4112_v58 = vsel %vm1552_vm6, %v4002_v17, %v1283_v31  ;;  %v2794_v31 = vld [vmem:[%s4441_s12 + $0x8] sm:$0xff]  }
 0x6de   :  { %v1286_v49 = vshrl.u32 %v1284_v20, 16  ;;  %v2795_v20 = vld [vmem:[%s4441_s12 + $0x50] sm:$0xff]  }
 0x6e0   :  { %v1288_v22 = vrot.slane %v1286_v49, 2 }
 0x6e2   :  { %1323 = vmatmul.mubr.bf16.vlgmr.msra.gmra.mrb[24].mxu0 %v1288_v22  ;;  %1364 = vmatmul.mubr.bf16.vlgmr.msra.gmra.mrb[32].mxu1 %v1288_v22  ;;  %v2796_v22 = vld [vmem:[%s4441_s12 + $0x10] sm:$0xff]  }
 0x6e3   :  { %1420 = vmatpush1.bf16.msra.mxu0 %v3892_v3  ;;  %1461 = vmatpush1.bf16.msra.mxu1 %v4008_v59  ;;  %v3009_v3 = vld [vmem:[%s4436_s7 + $0xcc] ss:$16 sps:$4 sm:$0xff]  }
 0x6e4   :  { %1421 = vmatprep.subr.bf16.mxu0 %v3899_v6  ;;  %1462 = vmatprep.subr.bf16.mxu1 %v4015_v8  ;;  %v3010_v6 = vld [vmem:[%s4436_s7 + $0xc8] ss:$16 sps:$4 sm:$0xff]  }
 0x6e5   :  { %1451 = vmatprep.mubr.bf16.mxu0 %v3254_v0  ;;  %1492 = vmatprep.mubr.bf16.mxu1 %v3254_v0 }
 0x6e7   :  { %1422 = vmatpush1.bf16.msra.mxu0 %v3908_v18  ;;  %1463 = vmatpush1.bf16.msra.mxu1 %v4024_v14  ;;  %v3011_v18 = vld [vmem:[%s4436_s7 + $0xec] ss:$16 sps:$4 sm:$0xff]  }
 0x6e8   :  { %1423 = vmatprep.subr.bf16.mxu0 %v3915_v32  ;;  %1464 = vmatprep.subr.bf16.mxu1 %v4031_v10  ;;  %v3012_v32 = vld [vmem:[%s4436_s7 + $0xe8] ss:$16 sps:$4 sm:$0xff]  }
 0x6eb   :  { %1424 = vmatpush1.bf16.msra.mxu0 %v3922_v34  ;;  %1465 = vmatpush1.bf16.msra.mxu1 %v4038_v13 }
 0x6ec   :  { %1425 = vmatprep.subr.bf16.mxu0 %v3929_v36  ;;  %1466 = vmatprep.subr.bf16.mxu1 %v4045_v16 }
 0x6ef   :  { %1426 = vmatpush1.bf16.msra.mxu0 %v3936_v38  ;;  %1467 = vmatpush1.bf16.msra.mxu1 %v4052_v33 }
 0x6f0   :  { %1427 = vmatprep.subr.bf16.mxu0 %v3943_v39  ;;  %1468 = vmatprep.subr.bf16.mxu1 %v4059_v19 }
 0x6f3   :  { %1428 = vmatpush1.bf16.msra.mxu0 %v3950_v41  ;;  %1469 = vmatpush1.bf16.msra.mxu1 %v4066_v21 }
 0x6f4   :  { %1429 = vmatprep.subr.bf16.mxu0 %v3957_v42  ;;  %1470 = vmatprep.subr.bf16.mxu1 %v4073_v23 }
 0x6f7   :  { %1430 = vmatpush1.bf16.msra.mxu0 %v3964_v43  ;;  %1471 = vmatpush1.bf16.msra.mxu1 %v4080_v35 }
 0x6f8   :  { %1431 = vmatprep.subr.bf16.mxu0 %v3971_v44  ;;  %1472 = vmatprep.subr.bf16.mxu1 %v3009_v3  ;;  %v2797_v3 = vld [vmem:[%s4441_s12 + $0x58] sm:$0xff]  }
 0x6fb   :  { %1432 = vmatpush1.bf16.msra.mxu0 %v3978_v45  ;;  %1473 = vmatpush1.bf16.msra.mxu1 %v3010_v6 }
 0x6fc   :  { %1433 = vmatprep.subr.bf16.mxu0 %v4090_v25  ;;  %1474 = vmatprep.subr.bf16.mxu1 %v3011_v18  ;;  %v2798_v18 = vld [vmem:[%s4441_s12 + $0x18] sm:$0xff]  }
 0x6ff   :  { %1434 = vmatpush1.bf16.msra.mxu0 %v4097_v27  ;;  %1475 = vmatpush1.bf16.msra.mxu1 %v3012_v32  ;;  %v2799_v32 = vld [vmem:[%s4441_s12 + $0x60] sm:$0xff]  }
 0x700   :  { %2675 = vmatprep.subr.bf16.mxu0 %v3255_v15  ;;  %2609 = vmatprep.subr.bf16.mxu1 %v2791_v47 }
 0x7b5   :  { %v1324_v34 = vpop.f32.mrb[24].mxu0  ;;  %v1365_v36 = vpop.f32.mrb[32].mxu1 }
 0x7b6   :  { %v1376_v38 = vrot.slane %v1324_v34, 2  ;;  %v1326_v39 = vpop.f32.mrb[25].mxu0  ;;  %v1367_v41 = vpop.f32.mrb[33].mxu1  ;;  %v1378_v10 = vrot.slane %v1365_v36, 2  ;;  %v2800_v34 = vld [vmem:[%s4441_s12 + $0x20] sm:$0xff]   ;;  %v2801_v36 = vld [vmem:[%s4441_s12 + $0x68] sm:$0xff]  }
 0x7b7   :  { %v1377_v42 = vrot.slane %v1326_v39, 2  ;;  %v1328_v43 = vpop.f32.mrb[26].mxu0  ;;  %v1369_v44 = vpop.f32.mrb[34].mxu1  ;;  %v1379_v13 = vrot.slane %v1367_v41, 2  ;;  %v2803_v39 = vld [vmem:[%s4441_s12 + $0x70] sm:$0xff]  }
 0x7b8   :  { %v1384_v45 = vadd.f32 %v1376_v38, %v3725_v5  ;;  %v1329_v60 = vpop.f32.mrb[27].mxu0  ;;  %v1370_v17 = vpop.f32.mrb[35].mxu1  ;;  %v1386_v16 = vadd.f32 %v1378_v10, %v3731_v52  ;;  %v2802_v38 = vld [vmem:[%s4441_s12 + $0x28] sm:$0xff]   ;;  %v2804_v41 = vld [vmem:[%s4441_s12 + $0x30] sm:$0xff]   ;;  %v2805_v43 = vld [vmem:[%s4441_s12 + $0x78] sm:$0xff]  }
 0x7b9   :  { %v1385_v59 = vadd.f32 %v1377_v42, %v3727_v7  ;;  %v1387_v33 = vadd.f32 %v1379_v13, %v3733_v54  ;;  %v4245_v42 = vld [vmem:[#allocation8] sm:$0xff] }
 0x7ba   :  { %v2542_v8 = vmul.f32 -1.442695, %v1384_v45  ;;  %v2544_v19 = vmul.f32 -1.442695, %v1386_v16  ;;  %v1772_v44 = vmul.f32 %v4245_v42, %v4245_v42  ;;  %v2806_v45 = vld [vmem:[%s4441_s12 + $0x38] sm:$0xff]  }
 0x7bb   :  { %v2543_v14 = vmul.f32 -1.442695, %v1385_v59 }
 0x7bc   :  { %2925 = vpow2.f32 %v2542_v8  ;;  %v1774_v60 = vpack.c.bf16 %v1772_v44, %v1772_v44  ;;  %v4266_v44 = vld [vmem:[#allocation7] sm:$0xff] }
 0x7bd   :  { %2927 = vpow2.f32 %v2543_v14 }
 0x7be   :  { %2929 = vtanh.f32 %v1387_v33 }
 0x7bf   :  { %2931 = vpow2.f32 %v2544_v19 }
 0x7c6   :  { %v2926_v21 = vpop.eup %2925 }
 0x7c7   :  { %v1397_v23 = vadd.f32 1.0, %v2926_v21  ;;  %v2928_v35 = vpop.eup %2927 }
 0x7c8   :  { %v1398_v25 = vadd.f32 1.0, %v2928_v35  ;;  %v2930_v27 = vpop.eup %2929 }
 0x7c9   :  { %2933 = vrcp.f32 %v1397_v23  ;;  %v2932_v30 = vpop.eup %2931 }
 0x7ca   :  { %2935 = vrcp.f32 %v1398_v25  ;;  %v1399_v50 = vadd.f32 1.0, %v2932_v30 }
 0x7cc   :  { %2937 = vrcp.f32 %v1399_v50 }
 0x7d3   :  { %v2934_v2 = vpop.eup %2933 }
 0x7d4   :  { %v1411_v26 = vmul.f32 %v2934_v2, %v2930_v27  ;;  %v2936_v28 = vpop.eup %2935 }
 0x7d5   :  { %v1410_v4 = vmul.f32 %v2936_v28, %v1408_v24 }
 0x7d6   :  { %v2938_v37 = vpop.eup %2937 }
 0x7d7   :  { %v4159_v46 = vadd.f32 %v1411_v26, %v1410_v4 }
 0x7d9   :  { %2939 = vtanh.f32 %v4159_v46 }
 0x7e3   :  { %v2940_v40 = vpop.eup %2939 }
 0x7e4   :  { %v1414_v51 = vmul.f32 %v2940_v40, %v2938_v37 }
 0x7e6   :  { %v1415_v55 = vpack.c.bf16 %v1414_v51, %v1414_v51  ;;  %v4164_v57 = vsel %vm239_vm0, %v4112_v58, %v1414_v51  ;;  %v4214_v58 = vld [vmem:[#allocation8 + $0x8] sm:$0xff] }
 0x7e7   :  { %v1773_v49 = vmul.f32 %v4214_v58, %v4214_v58 }
 0x7e8   :  { %v1417_v62 = vrot.slane %v1415_v55, 3  ;;  %v1537_v55 = vrot.slane %v4159_v46, 7  ;;  %v2807_v46 = vld [vmem:[#allocation13] ss:$8 sps:$4 sm:$0xff]  }
 0x7e9   :  { %v1775_v6 = vpack.c.bf16 %v1773_v49, %v1773_v49 }
 0x7ea   :  { %1452 = vmatmul.mubr.bf16.vlgmr.msra.gmra.mrb[28].mxu0 %v1417_v62  ;;  %1493 = vmatmul.mubr.bf16.vlgmr.msra.gmra.mrb[36].mxu1 %v1417_v62 }
 0x7eb   :  { %2676 = vmatpush3.bf16.msra.mxu0 %v2783_v63  ;;  %2691 = vmatprep.mubr.msk.bf16.mxu0 %vm3256_vm7, %v3255_v15 }
 0x7ec   :  { %2677 = vmatprep.subr.bf16.mxu0 %v3255_v15  ;;  %2610 = vmatpush3.bf16.msra.mxu1 %v2792_v48 }
 0x7ed   :  { %2611 = vmatprep.subr.bf16.mxu1 %v2793_v29  ;;  %1904 = vmatprep.mubr.bf16.mxu1 %v1775_v6 }
 0x7ef   :  { %2678 = vmatpush3.bf16.msra.mxu0 %v2784_v56 }
 0x7f0   :  { %2679 = vmatprep.subr.bf16.mxu0 %v3255_v15  ;;  %2612 = vmatpush3.bf16.msra.mxu1 %v2794_v31 }
 0x7f1   :  { %2613 = vmatprep.subr.bf16.mxu1 %v2795_v20 }
 0x7f3   :  { %2680 = vmatpush3.bf16.msra.mxu0 %v2785_v1 }
 0x7f4   :  { %2681 = vmatprep.subr.bf16.mxu0 %v3255_v15  ;;  %2614 = vmatpush3.bf16.msra.mxu1 %v2796_v22 }
 0x7f5   :  { %2615 = vmatprep.subr.bf16.mxu1 %v2797_v3 }
 0x7f7   :  { %2682 = vmatpush3.bf16.msra.mxu0 %v2786_v61 }
 0x7f8   :  { %2683 = vmatprep.subr.bf16.mxu0 %v3255_v15  ;;  %2616 = vmatpush3.bf16.msra.mxu1 %v2798_v18 }
 0x7f9   :  { %2617 = vmatprep.subr.bf16.mxu1 %v2799_v32 }
 0x7fb   :  { %2684 = vmatpush3.bf16.msra.mxu0 %v2787_v9 }
 0x7fc   :  { %2685 = vmatprep.subr.bf16.mxu0 %v3255_v15  ;;  %2618 = vmatpush3.bf16.msra.mxu1 %v2800_v34 }
 0x7fd   :  { %2619 = vmatprep.subr.bf16.mxu1 %v2801_v36 }
 0x7ff   :  { %2686 = vmatpush3.bf16.msra.mxu0 %v2788_v11 }
 0x800   :  { %2687 = vmatprep.subr.bf16.mxu0 %v3255_v15  ;;  %2620 = vmatpush3.bf16.msra.mxu1 %v2802_v38 }
 0x801   :  { %2621 = vmatprep.subr.bf16.mxu1 %v2803_v39 }
 0x803   :  { %2688 = vmatpush3.bf16.msra.mxu0 %v2789_v12 }
 0x804   :  { %2689 = vmatprep.subr.bf16.mxu0 %v3255_v15  ;;  %2622 = vmatpush3.bf16.msra.mxu1 %v2804_v41 }
 0x805   :  { %2623 = vmatprep.subr.bf16.mxu1 %v2805_v43 }
 0x807   :  { %2690 = vmatpush3.bf16.msra.mxu0 %v2790_v53  ;;  %v2809_v53 = vld [vmem:[#allocation13 + $0x4] ss:$8 sps:$4 sm:$0xff]  }
 0x808   :  { %2624 = vmatpush3.bf16.msra.mxu1 %v2806_v45  ;;  %1933 = vmatprep.subr.bf16.mxu0 %v2809_v53 }
 0x809   :  { %2631 = vmatprep.subr.bf16.mxu1 %v2791_v47  ;;  %v2548_v47 = vld [vmem:[%s4439_s10] ss:$0 sm:$0xff]  ;;  %s3258_s10 = smov 127  }
 0x80b   :  { %1905 = vmatmul.mubr.bf16.vlgmr.msra.gmra.mrb[40].mxu1 %v1774_v60  ;;  %v1691_v60 = vsel %vm1690_vm9, %v4266_v44, inf }
 0x80c   :  { %2632 = vmatpush3.bf16.msra.mxu1 %v2792_v48 }
 0x80d   :  { %2633 = vmatprep.subr.bf16.mxu1 %v2793_v29 }
 0x810   :  { %2634 = vmatpush3.bf16.msra.mxu1 %v2794_v31 }
 0x811   :  { %2635 = vmatprep.subr.bf16.mxu1 %v2795_v20 }
 0x814   :  { %2636 = vmatpush3.bf16.msra.mxu1 %v2796_v22 }
 0x815   :  { %2637 = vmatprep.subr.bf16.mxu1 %v2797_v3 }
 0x818   :  { %2638 = vmatpush3.bf16.msra.mxu1 %v2798_v18 }
 0x819   :  { %2639 = vmatprep.subr.bf16.mxu1 %v2799_v32 }
 0x81c   :  { %2640 = vmatpush3.bf16.msra.mxu1 %v2800_v34 }
 0x81d   :  { %2641 = vmatprep.subr.bf16.mxu1 %v2801_v36 }
 0x820   :  { %2642 = vmatpush3.bf16.msra.mxu1 %v2802_v38 }
 0x821   :  { %2643 = vmatprep.subr.bf16.mxu1 %v2803_v39 }
 0x824   :  { %2644 = vmatpush3.bf16.msra.mxu1 %v2804_v41 }
 0x825   :  { %2645 = vmatprep.subr.bf16.mxu1 %v2805_v43 }
 0x828   :  { %2646 = vmatpush3.bf16.msra.mxu1 %v2806_v45 }
 0x8bd   :  { %v1453_v17 = vpop.f32.mrb[28].mxu0  ;;  %v1494_v59 = vpop.f32.mrb[36].mxu1 }
 0x8be   :  { %v1505_v8 = vrot.slane %v1453_v17, 1  ;;  %v1455_v14 = vpop.f32.mrb[29].mxu0  ;;  %v1496_v10 = vpop.f32.mrb[37].mxu1  ;;  %v1507_v30 = vrot.slane %v1494_v59, 1 }
 0x8bf   :  { %v1506_v13 = vrot.slane %v1455_v14, 1  ;;  %v1457_v16 = vpop.f32.mrb[30].mxu0  ;;  %v1498_v33 = vpop.f32.mrb[38].mxu1  ;;  %v1508_v2 = vrot.slane %v1496_v10, 1  ;;  %v3259_v14 = vmov 32  }
 0x8c0   :  { %v1513_v19 = vadd.f32 %v1505_v8, %v3725_v5  ;;  %v1458_v21 = vpop.f32.mrb[31].mxu0  ;;  %v1499_v23 = vpop.f32.mrb[39].mxu1  ;;  %v1515_v24 = vadd.f32 %v1507_v30, %v3731_v52  ;;  %2716 = vset.pattern.permute.xlu1 %v3259_v14  ;;  %2715 = vset.pattern.permute.xlu0 %v3259_v14 }
 0x8c1   :  { %v1514_v35 = vadd.f32 %v1506_v13, %v3727_v7  ;;  %v1516_v26 = vadd.f32 %v1508_v2, %v3733_v54 }
 0x8c2   :  { %v2545_v25 = vmul.f32 -1.442695, %v1513_v19  ;;  %v2547_v28 = vmul.f32 -1.442695, %v1515_v24 }
 0x8c3   :  { %v2546_v27 = vmul.f32 -1.442695, %v1514_v35 }
 0x8c4   :  { %2941 = vpow2.f32 %v2545_v25 }
 0x8c5   :  { %2943 = vpow2.f32 %v2546_v27 }
 0x8c6   :  { %2945 = vtanh.f32 %v1516_v26 }
 0x8c7   :  { %2947 = vpow2.f32 %v2547_v28 }
 0x8ce   :  { %v2942_v50 = vpop.eup %2941 }
 0x8cf   :  { %v1526_v4 = vadd.f32 1.0, %v2942_v50  ;;  %v2944_v37 = vpop.eup %2943 }
 0x8d0   :  { %v1527_v5 = vadd.f32 1.0, %v2944_v37  ;;  %v2946_v7 = vpop.eup %2945 }
 0x8d1   :  { %2949 = vrcp.f32 %v1526_v4  ;;  %v2948_v40 = vpop.eup %2947 }
 0x8d2   :  { %2951 = vrcp.f32 %v1527_v5  ;;  %v1528_v56 = vadd.f32 1.0, %v2948_v40 }
 0x8d4   :  { %2953 = vrcp.f32 %v1528_v56 }
 0x8db   :  { %v2950_v51 = vpop.eup %2949 }
 0x8dc   :  { %v1540_v62 = vmul.f32 %v2950_v51, %v2946_v7  ;;  %v2952_v63 = vpop.eup %2951 }
 0x8dd   :  { %v1539_v52 = vmul.f32 %v2952_v63, %v1537_v55 }
 0x8de   :  { %v2954_v54 = vpop.eup %2953  ;;  %v2625_v22 = vpop.f32.mrb[40].mxu1 }
 0x8df   :  { %v1541_v1 = vadd.f32 %v1540_v62, %v1539_v52  ;;  %v2626_v3 = vpop.f32.mrb[41].mxu1 }
 0x8e0   :  { %v2627_v6 = vadd.f32 %v2626_v3, %v2625_v22  ;;  %v2628_v18 = vpop.f32.mrb[42].mxu1 }
 0x8e1   :  { %2955 = vtanh.f32 %v1541_v1  ;;  %1557 = vst [vmem:[#allocation17 - $0x7] sm:$0x80] %v1541_v1  ;;  %v2629_v32 = vpop.f32.mrb[43].mxu1 }
 0x8e2   :  { %vm1914_vm11 = vcmp.eq.f32.partialorder %v2627_v6, inf  ;;  %v1917_v35 = vand.u32 2147483648, %v2627_v6  ;;  %vm1916_vm12 = vcmp.eq.f32.partialorder %v2627_v6, 0.0 }
 0x8eb   :  { %v2956_v61 = vpop.eup %2955 }
 0x8ec   :  { %v1543_v9 = vmul.f32 %v2956_v61, %v2954_v54 }
 0x8ee   :  { %v1556_v11 = vsel %vm1555_vm8, %v4164_v57, %v1543_v9 }
 0x8ef   :  { %v1558_v12 = vpack.c.bf16 %v1556_v11, %v1556_v11  ;;  %2401 = vst [vmem:[#allocation14] sm:$0xff] %v1556_v11 }
 0x8f1   :  { %2692 = vmatmul.mubr.bf16.vlgmr.msra.gmra.mrb[32].mxu0 %v1558_v12 }
 0x8f2   :  { %1965 = vmatprep.mubr.bf16.mxu0 %v3254_v0  ;;  %1934 = vmatpush1.bf16.msra.mxu0 %v2807_v46 }
 0x9c4   :  { %v1664_v48 = vpop.f32.mrb[32].mxu0 }
 0x9c5   :  { %v1665_v29 = vadd.f32 %v2548_v47, %v1664_v48  ;;  %v2693_v31 = vpop.f32.mrb[33].mxu0  ;;  %v4305_v47 = vld [vmem:[#allocation11] ss:$8 sps:$4 sm:$0xff]   ;;  %v2812_v48 = vld [vmem:[#allocation11 + $0x4] ss:$8 sps:$4 sm:$0xff]  }
 0x9c6   :  { %v1667_v20 = vpop.f32.mrb[34].mxu0  ;;  %2113 = vmatprep.subr.bf16.mxu0 %v2812_v48 }
 0x9c7   :  { %2957 = vtanh.f32 %v1665_v29  ;;  %v2694_v49 = vpop.f32.mrb[35].mxu0  ;;  %v2557_v38 = vmul.f32 -1.442695, %v1665_v29 }
 0x9c9   :  { %2959 = vpow2.f32 %v2557_v38 }
 0x9d1   :  { %v2958_v57 = vpop.eup %2957 }
 0x9d2   :  { %1678 = vrot.lane.b32.xlu0 %v2958_v57, %s3257_s22  ;;  %v2023_v34 = vmul.f32 %v2958_v57, %v2958_v57 }
 0x9d3   :  { %v2960_v17 = vpop.eup %2959 }
 0x9d4   :  { %v2025_v36 = vsel %vm1690_vm9, %v2023_v34, 0.0  ;;  %v1674_v59 = vadd.f32 1.0, %v2960_v17 }
 0x9d6   :  { %2961 = vrcp.f32 %v1674_v59 }
 0x9d7   :  { %2963 = vrsqrt.f32 %v2627_v6 }
 0x9e0   :  { %v4273_v8 = vpop.eup %2961 }
 0x9e1   :  { %v2964_v16 = vpop.eup %2963  ;;  %v2077_v4 = vsub.f32 1.0, %v4273_v8 }
 0x9e2   :  { %v1913_v21 = vmul.f32 %v2964_v16, %v2627_v6 }
 0x9e4   :  { %v1915_v27 = vsel %vm1914_vm11, %v2627_v6, %v1913_v21  ;;  %v1689_v21 = vld [vmem:[#allocation5 + $0x8] sm:$0xff] }
 0x9e5   :  { %v1918_v26 = vsel %vm1916_vm12, %v1917_v35, %v1915_v27 }
 0x9f1   :  { %2026 = vadd.xlane.f32.xlu0 %v2025_v36 }
 0xa44   :  { %v1679_v39 = vpop.permute.xlu0 %1678 }
 0xa45   :  { %v1919_v41 = vpack.c.bf16 %v1679_v39, %v2958_v57  ;;  %v2024_v43 = vmul.f32 %v1679_v39, %v1679_v39 }
 0xa47   :  { %2578 = vmatmul.mubr.msk.bf16.vlgmr.msra.gmra.mrb[36].mxu0 %vm1690_vm9, %v1919_v41  ;;  %v2028_v45 = vsel %vm1690_vm9, %v2024_v43, 0.0 }
 0xa48   :  { %2029 = vadd.xlane.f32.xlu1 %v2028_v45  ;;  %2145 = vmatprep.mubr.bf16.mxu0 %v3254_v0 }
 0xa49   :  { %2114 = vmatpush1.bf16.msra.mxu0 %v4305_v47 }
 0xa4a   :  { %2158 = vmatprep.subr.bf16.mxu0 %v2812_v48 }
 0xa4c   :  { %1692 = vmin.xlane.f32.xlu1 %v1691_v60 }
 0xa5d   :  { %1682 = vrot.lane.b32.xlu1 %v4273_v8, %s3258_s10 }
 0xa7e   :  { %v2027_v31 = vpop.xlane.xlu0 %2026 }
 0xa7f   :  { %vm2033_vm0 = vcmp.eq.f32.partialorder %v2027_v31, inf  ;;  %v2036_v57 = vand.u32 2147483648, %v2027_v31  ;;  %vm2035_vm1 = vcmp.eq.f32.partialorder %v2027_v31, 0.0 }
 0xad5   :  { %v2030_v10 = vpop.xlane.xlu1 %2029 }
 0xad6   :  { %2965 = vrsqrt.f32 %v2030_v10  ;;  %vm2040_vm13 = vcmp.eq.f32.partialorder %v2030_v10, inf  ;;  %v2043_v30 = vand.u32 2147483648, %v2030_v10  ;;  %vm2042_vm14 = vcmp.eq.f32.partialorder %v2030_v10, 0.0 }
 0xad7   :  { %2967 = vrsqrt.f32 %v2027_v31 }
 0xad9   :  { %v1693_v13 = vpop.xlane.xlu1 %1692 }
 0xada   :  { %vm1694_vm10 = vcmp.le.f32.partialorder %v4266_v44, %v1693_v13 }
 0xadb   :  { %v1697_v33 = vsel %vm1694_vm10, 3e+38, %v4266_v44  ;;  %v2558_v46 = vsel %vm1694_vm10, 1.0, %v3255_v15 }
 0xadc   :  { %v1698_v19 = vsel %vm1690_vm9, %v1697_v33, inf  ;;  %v2098_v53 = vsub.f32 1.0, %v2558_v46  ;;  %v2814_v46 = vld [vmem:[%s4443_s14] sm:$0xff]  }
 0xadd   :  { %1699 = vmin.xlane.f32.xlu1 %v1698_v19  ;;  %v1683_v50 = vpop.permute.xlu1 %1682 }
 0xade   :  { %v2078_v37 = vsub.f32 1.0, %v1683_v50  ;;  %v2099_v29 = vpack.c.bf16 %v2098_v53, %v2098_v53  ;;  %v2815_v53 = vld [vmem:[%s4443_s14 + $0x48] sm:$0xff]  }
 0xae0   :  { %v2966_v23 = vpop.eup %2965  ;;  %2581 = vmatmul.mubr.msk.bf16.vlgmr.msra.gmra.mrb[40].mxu0 %vm1690_vm9, %v2099_v29  ;;  %v2819_v29 = vld [vmem:[%s4443_s14 + $0x58] sm:$0xff]  }
 0xae1   :  { %v2039_v25 = vmul.f32 %v2966_v23, %v2030_v10  ;;  %2159 = vmatpush1.bf16.msra.mxu0 %v4305_v47  ;;  %2190 = vmatprep.mubr.bf16.mxu0 %v3254_v0  ;;  %v2968_v20 = vpop.eup %2967 }
 0xae2   :  { %2215 = vmatprep.subr.bf16.mxu0 %v2812_v48  ;;  %v2818_v48 = vld [vmem:[%s4443_s14 + $0x10] sm:$0xff]  }
 0xae3   :  { %v2041_v2 = vsel %vm2040_vm13, %v2030_v10, %v2039_v25 }
 0xae4   :  { %v2044_v24 = vsel %vm2042_vm14, %v2043_v30, %v2041_v2 }
 0xae5   :  { %v2046_v28 = vmul.f32 %v2044_v24, %v1918_v26 }
 0xae7   :  { %v2048_v18 = vadd.f32 1e-08, %v2046_v28 }
 0xaee   :  { %2072 = vperm.xlu1 %2716, %v1683_v50   ;;  %v1688_v50 = vld [vmem:[#allocation5] sm:$0xff] }
 0xaf2   :  { %2081 = vperm.xlu1 %2716, %v2077_v4  }
 0xaf6   :  { %2086 = vperm.xlu1 %2716, %v2078_v37  }
 0xb1a   :  { %v4282_v5 = vpop.f32.mrb[36].mxu0 }
 0xb1b   :  { %v4284_v7 = vpop.f32.mrb[37].mxu0  ;;  %v1976_v51 = vmul.f32 %v4282_v5, %v4245_v42 }
 0xb1c   :  { %v4286_v40 = vpop.f32.mrb[38].mxu0  ;;  %v1977_v63 = vmul.f32 %v4284_v7, %v4214_v58 }
 0xb1d   :  { %v1978_v55 = vmul.f32 %v4286_v40, %v4245_v42  ;;  %v4292_v62 = vpop.f32.mrb[39].mxu0 }
 0xb1e   :  { %v1979_v56 = vmul.f32 %v4292_v62, %v4214_v58 }
 0xb1f   :  { %v1980_v52 = vpack.c.bf16 %v1978_v55, %v1976_v51 }
 0xb20   :  { %v1981_v1 = vpack.c.bf16 %v1979_v56, %v1977_v63 }
 0xb22   :  { %2014 = vmatprep.mubr.bf16.mxu1 %v1981_v1 }
 0xb23   :  { %2015 = vmatmul.mubr.bf16.vlgmr.msra.gmra.mrb[44].mxu1 %v1980_v52 }
 0xb6a   :  { %v1700_v54 = vpop.xlane.xlu1 %1699 }
 0xb6b   :  { %vm1701_vm15 = vcmp.le.f32.partialorder %v4266_v44, %v1700_v54  ;;  %v2813_v54 = vld [vmem:[%s4443_s14 + $0x40] sm:$0xff]  }
 0xb6c   :  { %v2559_v9 = vsel %vm1701_vm15, 1.0, %v3255_v15  ;;  %v2032_v15 = vmul.f32 %v2968_v20, %v2027_v31  ;;  %v2821_v20 = vld [vmem:[%s4443_s14 + $0x60] sm:$0xff]  }
 0xb6e   :  { %v2073_v61 = vpop.permute.xlu1 %2072  ;;  %v2034_v49 = vsel %vm2033_vm0, %v2027_v31, %v2032_v15  ;;  %v2820_v31 = vld [vmem:[%s4443_s14 + $0x18] sm:$0xff]   ;;  %v2822_v15 = vld [vmem:[%s4443_s14 + $0x20] sm:$0xff]  }
 0xb6f   :  { %v2037_v22 = vsel %vm2035_vm1, %v2036_v57, %v2034_v49  ;;  %v2076_v35 = vmul.f32 %v2073_v61, %v1689_v21  ;;  %v2096_v61 = vmul.f32 0.95, %v4266_v44  ;;  %v2823_v49 = vld [vmem:[%s4443_s14 + $0x68] sm:$0xff]  }
 0xb70   :  { %v2045_v3 = vmul.f32 %v2037_v22, %v1918_v26  ;;  %v2824_v57 = vld [vmem:[%s4443_s14 + $0x28] sm:$0xff]   ;;  %v2825_v22 = vld [vmem:[%s4443_s14 + $0x70] sm:$0xff]  }
 0xb72   :  { %v2082_v11 = vpop.permute.xlu1 %2081  ;;  %v2047_v6 = vadd.f32 1e-08, %v2045_v3  ;;  %v2826_v3 = vld [vmem:[%s4443_s14 + $0x30] sm:$0xff]  }
 0xb73   :  { %v4300_v12 = vmul.f32 %v2559_v9, %v2082_v11 }
 0xb74   :  { %2969 = vrcp.f32 %v2047_v6  ;;  %v2827_v6 = vld [vmem:[%s4443_s14 + $0x78] sm:$0xff]  }
 0xb75   :  { %2971 = vrcp.f32 %v2048_v18  ;;  %v2828_v18 = vld [vmem:[%s4443_s14 + $0x38] sm:$0xff]  }
 0xb76   :  { %v2087_v19 = vpop.permute.xlu1 %2086 }
 0xb77   :  { %v2090_v23 = vmul.f32 %v2559_v9, %v2087_v19 }
 0xb79   :  { %v2092_v25 = vadd.f32 %v2090_v23, %v2076_v35 }
 0xb7e   :  { %v2970_v39 = vpop.eup %2969 }
 0xb7f   :  { %v2972_v60 = vpop.eup %2971 }
 0xbb3   :  { %v2147_v27 = vpop.f32.mrb[40].mxu0 }
 0xbb4   :  { %v4314_v30 = vpop.f32.mrb[41].mxu0 }
 0xbb5   :  { %v2151_v2 = vpop.f32.mrb[42].mxu0 }
 0xbb6   :  { %v2152_v24 = vpop.f32.mrb[43].mxu0 }
 0xbf6   :  { %v2647_v32 = vpop.f32.mrb[44].mxu1 }
 0xbf7   :  { %v2648_v34 = vpop.f32.mrb[45].mxu1 }
 0xbf8   :  { %v2649_v36 = vadd.f32 %v2648_v34, %v2647_v32  ;;  %v2650_v38 = vpop.f32.mrb[46].mxu1  ;;  %v2205_v34 = vmul.f32 %v2147_v27, %v4245_v42 }
 0xbf9   :  { %v2651_v41 = vpop.f32.mrb[47].mxu1 }
 0xbfa   :  { %v2050_v43 = vmul.f32 %v2970_v39, %v2649_v36  ;;  %v2652_v45 = vadd.f32 %v2651_v41, %v2650_v38  ;;  %v2206_v39 = vmul.f32 %v4314_v30, %v4214_v58 }
 0xbfc   :  { %v2053_v17 = vmul.f32 1.442695, %v2050_v43  ;;  %v2052_v59 = vmul.f32 %v2972_v60, %v2652_v45 }
 0xbfe   :  { %2973 = vpow2.f32 %v2053_v17  ;;  %v2055_v14 = vmul.f32 1.442695, %v2052_v59 }
 0xc00   :  { %2975 = vpow2.f32 %v2055_v14 }
 0xc08   :  { %v2974_v10 = vpop.eup %2973 }
 0xc09   :  { %v2057_v13 = vsel %vm1690_vm9, %v2974_v10, 0.0 }
 0xc0a   :  { %v2976_v16 = vpop.eup %2975  ;;  %2058 = vadd.xlane.f32.xlu0 %v2057_v13 }
 0xc0b   :  { %v2060_v33 = vsel %vm1690_vm9, %v2976_v16, 0.0 }
 0xc0e   :  { %2061 = vadd.xlane.f32.xlu0 %v2060_v33 }
 0xc24   :  { %2068 = vperm.xlu0 %2715, %v4273_v8  }
 0xc28   :  { %2409 = vrot.lane.b32.xlu0 %v2092_v25, %s3260_s6 }
 0xc97   :  { %v2059_v26 = vpop.xlane.xlu0 %2058 }
 0xc98   :  { %2977 = vrcp.f32 %v2059_v26 }
 0xc9b   :  { %v2062_v28 = vpop.xlane.xlu0 %2061 }
 0xc9c   :  { %2979 = vrcp.f32 %v2062_v28 }
 0xca2   :  { %v2978_v4 = vpop.eup %2977 }
 0xca3   :  { %v2069_v37 = vpop.permute.xlu0 %2068  ;;  %v4316_v63 = vmul.f32 %v2978_v4, %v2974_v10 }
 0xca4   :  { %v2075_v51 = vmul.f32 %v2069_v37, %v1688_v50 }
 0xca6   :  { %v2980_v55 = vpop.eup %2979  ;;  %v2091_v8 = vadd.f32 %v4300_v12, %v2075_v51 }
 0xca7   :  { %v4319_v56 = vmul.f32 %v2980_v55, %v2976_v16 }
 0xca8   :  { %v2093_v52 = vadd.f32 %v2091_v8, %v4316_v63  ;;  %v2154_v1 = vpack.c.bf16 %v2092_v25, %v2091_v8  ;;  %2407 = vrot.lane.b32.xlu1 %v2091_v8, %s3260_s6 }
 0xca9   :  { %v2094_v9 = vadd.f32 %v2092_v25, %v4319_v56  ;;  %v2211_v44 = vpack.c.bf16 %v4319_v56, %v4316_v63 }
 0xcaa   :  { %2582 = vmatmul.mubr.msk.bf16.vlgmr.msra.gmra.mrb[44].mxu0 %vm1690_vm9, %v2154_v1 }
 0xcab   :  { %v2095_v11 = vadd.f32 %v2094_v9, %v2093_v52  ;;  %2216 = vmatpush1.bf16.msra.mxu0 %v4305_v47  ;;  %2247 = vmatprep.mubr.bf16.mxu0 %v3254_v0  ;;  %v2816_v0 = vld [vmem:[%s4443_s14 + $0x8] sm:$0xff]   ;;  %v2817_v47 = vld [vmem:[%s4443_s14 + $0x50] sm:$0xff]   ;;  %s3261_s14 = smov [#allocation14]  }
 0xcac   :  { %2653 = vmatprep.subr.bf16.mxu0 %v2813_v54  ;;  %s2435_s0 = sshll.u32 %s3261_s14, 4  ;;  %s2436_s0 = int_to_ptr.vmem [resolvable:$true] %s2435_s0 }
 0xcad   :  { %v2097_v12 = vadd.f32 %v2096_v61, %v2095_v11  ;;  %s3167_s27 = scalar_lea.vmem %s2436_s0, 512  ;;  %p3172_p1 = scmp.lt.s32.totalorder %s2436_s0, %s2436_s0 }
 0xcae   :  { %p3168_p0 = scmp.ne.s32.totalorder %s2436_s0, %s3167_s27  ;;  %p3173_p2 = scmp.lt.s32.totalorder %s3167_s27, %s3167_s27 }
 0xcaf   :  { %2404 = vst.msk [vmem:[#allocation14 + $0x18] sm:$0xff] %vm1690_vm9, %v2097_v12 }
 0xcb0   :  { %p3174_p3 = por %p3173_p2, %p3172_p1 }
 0xcb2   :  { %2583 = vmatmul.mubr.msk.bf16.vlgmr.msra.gmra.mrb[48].mxu0 %vm1690_vm9, %v2211_v44  ;;  %p3175_p4 = pnand %p3174_p3, %p3168_p0 }
 0xcb3   :  { %2654 = vmatpush3.bf16.msra.mxu0 %v2814_v46 }
 0xcb4   :  { %2655 = vmatprep.subr.bf16.mxu0 %v2815_v53 }
 0xcb7   :  { %2656 = vmatpush3.bf16.msra.mxu0 %v2816_v0 }
 0xcb8   :  { %2657 = vmatprep.subr.bf16.mxu0 %v2817_v47 }
 0xcbb   :  { %2658 = vmatpush3.bf16.msra.mxu0 %v2818_v48 }
 0xcbc   :  { %2659 = vmatprep.subr.bf16.mxu0 %v2819_v29 }
 0xcbf   :  { %2660 = vmatpush3.bf16.msra.mxu0 %v2820_v31 }
 0xcc0   :  { %2661 = vmatprep.subr.bf16.mxu0 %v2821_v20 }
 0xcc3   :  { %2662 = vmatpush3.bf16.msra.mxu0 %v2822_v15 }
 0xcc4   :  { %2663 = vmatprep.subr.bf16.mxu0 %v2823_v49 }
 0xcc7   :  { %2664 = vmatpush3.bf16.msra.mxu0 %v2824_v57 }
 0xcc8   :  { %2665 = vmatprep.subr.bf16.mxu0 %v2825_v22 }
 0xccb   :  { %2666 = vmatpush3.bf16.msra.mxu0 %v2826_v3 }
 0xccc   :  { %2667 = vmatprep.subr.bf16.mxu0 %v2827_v6 }
 0xccf   :  { %2668 = vmatpush3.bf16.msra.mxu0 %v2828_v18 }
 0xd7d   :  { %v2192_v32 = vpop.f32.mrb[44].mxu0 }
 0xd7e   :  { %v2201_v36 = vmul.f32 %v2192_v32, %v4282_v5  ;;  %v2194_v38 = vpop.f32.mrb[45].mxu0 }
 0xd7f   :  { %v2202_v41 = vmul.f32 %v2194_v38, %v4284_v7  ;;  %v2196_v43 = vpop.f32.mrb[46].mxu0 }
 0xd80   :  { %v2207_v45 = vadd.f32 %v2205_v34, %v2201_v36  ;;  %v2203_v60 = vmul.f32 %v2196_v43, %v4286_v40  ;;  %v2198_v17 = vpop.f32.mrb[47].mxu0 }
 0xd81   :  { %v2208_v59 = vadd.f32 %v2206_v39, %v2202_v41  ;;  %v2204_v14 = vmul.f32 %v2198_v17, %v4292_v62 }
 0xd82   :  { %v2209_v10 = vadd.f32 %v2207_v45, %v2203_v60 }
 0xd83   :  { %v2210_v13 = vadd.f32 %v2208_v59, %v2204_v14 }
 0xd84   :  { %2402 = vst [vmem:[#allocation14 + $0x8] sm:$0xff] %v2209_v10 }
 0xd85   :  { %2403 = vst [vmem:[#allocation14 + $0x10] sm:$0xff] %v2210_v13  ;;  %v2249_v42 = vpop.f32.mrb[48].mxu0 }
 0xd86   :  { %v2258_v5 = vmul.f32 %v2249_v42, %v2209_v10  ;;  %v2251_v16 = vpop.f32.mrb[49].mxu0 }
 0xd87   :  { %v2259_v33 = vmul.f32 %v2251_v16, %v2210_v13  ;;  %v2253_v19 = vpop.f32.mrb[50].mxu0 }
 0xd88   :  { %v2260_v58 = vmul.f32 %v2253_v19, %v2209_v10  ;;  %v2255_v21 = vpop.f32.mrb[51].mxu0 }
 0xd89   :  { %v2261_v7 = vmul.f32 %v2255_v21, %v2210_v13 }
 0xd8a   :  { %v2262_v23 = vpack.c.bf16 %v2260_v58, %v2258_v5 }
 0xd8b   :  { %v2263_v35 = vpack.c.bf16 %v2261_v7, %v2259_v33 }
 0xd8d   :  { %2392 = vmatprep.mubr.bf16.mxu0 %v2263_v35 }
 0xd8e   :  { %2393 = vmatmul.mubr.bf16.vlgmr.msra.gmra.mrb[52].mxu0 %v2262_v23 }
 0xd8f   :  { %3178 = shalt.err (!%p3175_p4)
}
 0xd90   :  { %s3179_s29 = scalar_lea.hbm %s4444_s15, 512 }
 0xd91   :  { %p3180_p5 = scmp.ne.s32.totalorder %s4444_s15, %s3179_s29  ;;  %p3183_p6 = scmp.lt.u32.totalorder %s3179_s29, %s4444_s15 }
 0xd93   :  { %p3185_p7 = pnand %p3183_p6, %p3180_p5 }
 0xd95   :  { %3188 = shalt.err (!%p3185_p7)
}
 0xd96   :  { %2438 = dma.vmem_to_hbm [thread:$0]  %s2436_s0, 512, %s4444_s15, [#allocation4]   ;;  %v2408_v24 = vpop.permute.xlu1 %2407  ;;  %v2410_v26 = vpop.permute.xlu0 %2409  ;;  %vm2423_vm2 = vcmask 261120   ;;  %vm2426_vm3 = vcmask 392192  }
 0xd97   :  { %s3262_s21 = smov 32   ;;  %s3263_s4 = smov [#allocation15]   ;;  %v2421_v28 = vsel %vm1690_vm9, %v4316_v63, %v2408_v24  ;;  %v2422_v37 = vsel %vm1690_vm9, %v4319_v56, %v2410_v26 }
 0xd98   :  { %s2444_s25 = sshll.u32 %s3263_s4, 4  ;;  %s3264_s15 = smov [#allocation17]   ;;  %s2445_s25 = int_to_ptr.vmem [resolvable:$true] %s2444_s25 }
 0xd99   :  { %s2457_s7 = sshll.u32 %s3264_s15, 4  ;;  %s3189_s12 = scalar_lea.vmem %s2445_s25, 256  ;;  %s2458_s7 = int_to_ptr.vmem [resolvable:$true] %s2457_s7 }
 0xd9a   :  { %p3190_p8 = scmp.ne.s32.totalorder %s2445_s25, %s3189_s12  ;;  %p3194_p9 = scmp.lt.s32.totalorder %s2445_s25, %s2445_s25 }
 0xd9b   :  { %p3195_p10 = scmp.lt.s32.totalorder %s3189_s12, %s3189_s12 }
 0xd9d   :  { %p3196_p11 = por %p3195_p10, %p3194_p9 }
 0xd9f   :  { %p3197_p12 = pnand %p3196_p11, %p3190_p8 }
 0xe61   :  { %v2669_v40 = vpop.f32.mrb[52].mxu0 }
 0xe62   :  { %v2670_v62 = vpop.f32.mrb[53].mxu0 }
 0xe63   :  { %v2671_v25 = vadd.f32 %v2670_v62, %v2669_v40  ;;  %v2672_v27 = vpop.f32.mrb[54].mxu0 }
 0xe64   :  { %v2673_v30 = vpop.f32.mrb[55].mxu0 }
 0xe65   :  { %v2674_v2 = vadd.f32 %v2673_v30, %v2672_v27  ;;  %2415 = vrot.lane.b32.xlu1 %v2671_v25, %s3262_s21 }
 0xe67   :  { %2417 = vrot.lane.b32.xlu0 %v2674_v2, %s3262_s21 }
 0xed7   :  { %v2416_v50 = vpop.permute.xlu1 %2415 }
 0xed8   :  { %v2424_v4 = vsel %vm2423_vm2, %v2421_v28, %v2416_v50 }
 0xed9   :  { %v2418_v51 = vpop.permute.xlu0 %2417  ;;  %2427 = vst.msk [vmem:[#allocation15] sm:$0xff] %vm2426_vm3, %v2424_v4 }
 0xeda   :  { %v2425_v55 = vsel %vm2423_vm2, %v2422_v37, %v2418_v51 }
 0xedb   :  { %2428 = vst.msk [vmem:[#allocation15 + $0x8] sm:$0xff] %vm2426_vm3, %v2425_v55 }
 0xedc   :  { %3200 = shalt.err (!%p3197_p12)
}
 0xedd   :  { %s3201_s10 = scalar_lea.hbm %s4445_s16, 256 }
 0xede   :  { %p3202_p13 = scmp.ne.s32.totalorder %s4445_s16, %s3201_s10  ;;  %p3205_p0 = scmp.lt.u32.totalorder %s3201_s10, %s4445_s16 }
 0xee0   :  { %p3207_p1 = pnand %p3205_p0, %p3202_p13 }
 0xee2   :  { %3210 = shalt.err (!%p3207_p1)
}
 0xee3   :  { %2450 = dma.vmem_to_hbm [thread:$0]  %s2445_s25, 256, %s4445_s16, [#allocation16], %s3246_s1, %s3246_s1, %s3247_s20  }
 0xee4   :  { %s3211_s28 = scalar_lea.vmem %s2458_s7, 16  ;;  %s3215_s14 = scalar_lea.vmem %s2458_s7, 32 }
 0xee5   :  { %p3212_p2 = scmp.ne.s32.totalorder %s2458_s7, %s3211_s28  ;;  %p3216_p3 = scmp.lt.s32.totalorder %s2458_s7, %s2458_s7 }
 0xee6   :  { %p3217_p4 = scmp.lt.s32.totalorder %s3215_s14, %s3211_s28 }
 0xee8   :  { %p3218_p5 = por %p3217_p4, %p3216_p3 }
 0xeea   :  { %p3219_p6 = pnand %p3218_p5, %p3212_p2 }
 0xeec   :  { %3222 = shalt.err (!%p3219_p6)
}
 0xeed   :  { %s4454_s30 = sld [smem:[#allocation26_spill]] }
 0xef3   :  { %s3223_s8 = scalar_lea.hbm %s4454_s30, 16 }
 0xef4   :  { %p3224_p7 = scmp.ne.s32.totalorder %s4454_s30, %s3223_s8  ;;  %p3227_p8 = scmp.lt.u32.totalorder %s3223_s8, %s4454_s30 }
 0xef6   :  { %p3229_p9 = pnand %p3227_p8, %p3224_p7 }
 0xef8   :  { %3232 = shalt.err (!%p3229_p9)
}
 0xef9   :  { %2460 = dma.vmem_to_hbm [thread:$0]  %s2458_s7, 16, %s4454_s30, [#allocation16]  }
 0xefa   :  { %3241 = dma.done.wait [#allocation4], 512  }
 0xefb   :  { %3242 = vsyncadd [#allocation4], 4294966784 }
 0xefc   :  { %3243 = dma.done.wait [#allocation16], 272  }
 0xefd   :  { %3244 = vsyncadd [#allocation16], 4294967024 }
 0xefe   :  { %2470 = vsyncpa [#allocation3], 1 }
 0xeff   :  { %2471 = vsyncpa [#allocation6], 1 }
 0xf00   :  { %2472 = vsyncpa [#allocation9], 1 }
 0xf01   :  { %2473 = vsyncpa [#allocation12], 1 }
 0xf02   :  { %2474 = vsyncpa [#allocation4], 1 }
 0xf03   :  { %2475 = vsyncpa [#allocation16], 1 }

</bundles_post_ra>
